<compile_context>
chip_gen: v6e
topology: v6e:2x2x1
jax: 0.10.0
libtpu: 0.0.40
codegen_flags: <defaults>
</compile_context>

<pallas_src>
import functools

import jax
import jax.numpy as jnp
from jax.experimental import pallas as pl
from jax.experimental.pallas import tpu as pltpu


def _silu(x):
    return x * jax.nn.sigmoid(x)


def _bn_scale_bias(gamma, beta, mean, var, eps=1e-3):
    scale = gamma / jnp.sqrt(var + eps)
    bias = beta - mean * scale
    return scale, bias


def _fused_dwconv_kernel(x_ref, dw_w_ref, dw_b_ref, pw_w_ref, pw_b_ref, o_ref, *,
                         ksize, stride):
    """Fused depthwise conv + BN + SiLU -> 1x1 conv + BN + SiLU on one output tile.

    x_ref   : (TH_in, Wp, Cin)  haloed, already-padded input rows for this tile
    dw_w_ref: (k, k, Cin)       depthwise taps with BN scale folded in
    dw_b_ref: (1, Cin)          depthwise BN bias
    pw_w_ref: (Cin, Cout)       1x1 conv weights with BN scale folded in
    pw_b_ref: (1, Cout)         pointwise BN bias
    o_ref   : (TH, Wo, Cout)
    """
    th, wo, cout = o_ref.shape
    cin = x_ref.shape[-1]

    x = x_ref[...].astype(jnp.float32)
    w = dw_w_ref[...].astype(jnp.float32)

    # Depthwise conv: unrolled over the small static tap grid.
    acc = jnp.zeros((th, wo, cin), jnp.float32)
    for kh in range(ksize):
        for kw in range(ksize):
            if stride == 1:
                patch = x[kh:kh + th, kw:kw + wo, :]           # static slice
            else:
                # TODO(synk): stride>1 path uses a strided slice; if Mosaic rejects
                # it for some shapes, pre-stride the W axis in the wrapper instead.
                patch = jax.lax.slice(
                    x,
                    (kh, kw, 0),
                    (kh + (th - 1) * stride + 1, kw + (wo - 1) * stride + 1, cin),
                    (stride, stride, 1),
                )
            acc = acc + patch * w[kh, kw, :]

    dw_act = _silu(acc + dw_b_ref[...].reshape(1, 1, cin))      # (TH, Wo, Cin) f32

    # Pointwise 1x1 conv as an MXU matmul over the flattened tile rows.
    lhs = dw_act.reshape(th * wo, cin)
    y = jnp.dot(lhs, pw_w_ref[...].astype(jnp.float32),
                preferred_element_type=jnp.float32)
    y = _silu(y + pw_b_ref[...])                                # (TH*Wo, Cout)
    o_ref[...] = y.reshape(th, wo, cout).astype(o_ref.dtype)


def _pick_block_h(ho, th_in_of, wp, cin, wo, cout, itemsize,
                  max_block_h=64, budget_bytes=12 * 1024 * 1024):
    """Largest divisor of Ho whose double-buffered per-step footprint fits budget."""
    best = 1
    for d in range(1, min(ho, max_block_h) + 1):
        if ho % d:
            continue
        th_in = th_in_of(d)
        in_bytes = th_in * wp * cin * itemsize
        out_bytes = d * wo * cout * itemsize
        inter_bytes = d * wo * (cin + cout) * 4
        if 2 * (in_bytes + out_bytes) + inter_bytes <= budget_bytes:
            best = d
    return best


def dwconv_forward(x_nchw, params, *, ksize, stride=1, block_h=None):
    """Forward pass equivalent to DWConv.forward (inference-mode BatchNorm)."""
    x = jnp.transpose(x_nchw, (0, 2, 3, 1))                     # NCHW -> NHWC
    N, H, W, Cin = x.shape
    pad = (ksize - 1) // 2
    Ho = (H + 2 * pad - ksize) // stride + 1
    Wo = (W + 2 * pad - ksize) // stride + 1
    Wp = W + 2 * pad
    Cout = params["pw_weight"].shape[1]

    # Fold BN scale into the conv weights; kernels only add bias + SiLU.
    dscale, dbias = _bn_scale_bias(*params["dw_bn"])
    pscale, pbias = _bn_scale_bias(*params["pw_bn"])
    dw_w = params["dw_weight"].astype(jnp.float32) * dscale[None, None, :]
    pw_w = params["pw_weight"].astype(jnp.float32) * pscale[None, :]

    def th_in_of(th):
        return (th - 1) * stride + ksize

    if block_h is None:
        block_h = _pick_block_h(Ho, th_in_of, Wp, Cin, Wo, Cout, x.dtype.itemsize)
    assert Ho % block_h == 0, (Ho, block_h)
    num_t = Ho // block_h
    th_in = th_in_of(block_h)

    # Pad once, then gather the (overlapping) halo rows of each H-tile so the
    # kernel sees plain non-overlapping blocks and gets automatic double-buffering.
    xp = jnp.pad(x, ((0, 0), (pad, pad), (pad, pad), (0, 0)))
    row_idx = (jnp.arange(num_t) * (block_h * stride))[:, None] \
        + jnp.arange(th_in)[None, :]
    xt = jnp.take(xp, row_idx, axis=1)                          # (N, num_t, TH_in, Wp, Cin)

    flops = 2 * N * Ho * Wo * Cin * (ksize * ksize + Cout)
    transcendentals = N * Ho * Wo * (Cin + Cout)
    bytes_accessed = (xt.size * xt.dtype.itemsize
                      + (dw_w.size + pw_w.size + Cin + Cout) * 4
                      + N * Ho * Wo * Cout * x.dtype.itemsize)

    # Per-step VMEM footprint: double-buffered in/out tiles + f32 intermediates + weights.
    tile_bytes = (2 * th_in * Wp * Cin * x.dtype.itemsize
                  + 2 * block_h * Wo * Cout * x.dtype.itemsize
                  + block_h * Wo * (Cin + Cout) * 4
                  + (dw_w.size + pw_w.size + Cin + Cout) * 4)
    compiler_kwargs = dict(dimension_semantics=("parallel", "parallel"))
    if tile_bytes > 24 * 1024 * 1024:
        compiler_kwargs["vmem_limit_bytes"] = int(min(2 * tile_bytes, 64 * 1024 * 1024))

    out = pl.pallas_call(
        functools.partial(_fused_dwconv_kernel, ksize=ksize, stride=stride),
        out_shape=jax.ShapeDtypeStruct((N, Ho, Wo, Cout), x.dtype),
        grid=(N, num_t),
        in_specs=[
            pl.BlockSpec((None, None, th_in, Wp, Cin), lambda n, t: (n, t, 0, 0, 0)),
            pl.BlockSpec((ksize, ksize, Cin), lambda n, t: (0, 0, 0)),
            pl.BlockSpec((1, Cin), lambda n, t: (0, 0)),
            pl.BlockSpec((Cin, Cout), lambda n, t: (0, 0)),
            pl.BlockSpec((1, Cout), lambda n, t: (0, 0)),
        ],
        out_specs=pl.BlockSpec((None, block_h, Wo, Cout), lambda n, t: (n, t, 0, 0)),
        compiler_params=pltpu.CompilerParams(**compiler_kwargs),
        cost_estimate=pl.CostEstimate(flops=flops,
                                      transcendentals=transcendentals,
                                      bytes_accessed=bytes_accessed),
    )(
        xt,
        dw_w,
        dbias.reshape(1, Cin).astype(jnp.float32),
        pw_w,
        pbias.reshape(1, Cout).astype(jnp.float32),
    )

    return jnp.transpose(out, (0, 3, 1, 2))                     # NHWC -> NCHW


def init_params(key, in_channels, out_channels, ksize):
    """Deterministic synthetic parameters matching DWConv's parameter shapes."""
    k_dw, k_pw, k_bn1, k_bn2 = jax.random.split(key, 4)
    # dconv: nn.Conv2d(C, C, k, groups=C, bias=False) -> weight (C,1,k,k); stored (k,k,C)
    dw_weight = 0.1 * jax.random.normal(k_dw, (ksize, ksize, in_channels), jnp.float32)
    # pconv: nn.Conv2d(C, Cout, 1, bias=False) -> weight (Cout,C,1,1); stored (C,Cout)
    pw_weight = 0.1 * jax.random.normal(k_pw, (in_channels, out_channels), jnp.float32)
    # BatchNorm params (gamma, beta, running_mean, running_var), eps=0.001
    dw_bn = (
        1.0 + 0.05 * jax.random.normal(k_bn1, (in_channels,), jnp.float32),
        0.01 * jnp.arange(in_channels, dtype=jnp.float32),
        0.02 * jnp.arange(in_channels, dtype=jnp.float32),
        jnp.ones((in_channels,), jnp.float32),
    )
    pw_bn = (
        1.0 + 0.05 * jax.random.normal(k_bn2, (out_channels,), jnp.float32),
        0.01 * jnp.arange(out_channels, dtype=jnp.float32),
        0.02 * jnp.arange(out_channels, dtype=jnp.float32),
        jnp.ones((out_channels,), jnp.float32),
    )
    return {"dw_weight": dw_weight, "pw_weight": pw_weight, "dw_bn": dw_bn, "pw_bn": pw_bn}


def _reference(x_nchw, params, ksize, stride, eps=1e-3):
    """Pure-JAX reference (lax convolutions) matching DWConv.forward semantics."""
    pad = (ksize - 1) // 2
    Cin = params["dw_weight"].shape[-1]
    x = jnp.transpose(x_nchw, (0, 2, 3, 1))
    w_dw = params["dw_weight"].reshape(ksize, ksize, 1, Cin)
    y = jax.lax.conv_general_dilated(
        x, w_dw, window_strides=(stride, stride),
        padding=((pad, pad), (pad, pad)),
        dimension_numbers=("NHWC", "HWIO", "NHWC"),
        feature_group_count=Cin)
    g, b, m, v = params["dw_bn"]
    y = (y - m) / jnp.sqrt(v + eps) * g + b
    y = y * jax.nn.sigmoid(y)
    w_pw = params["pw_weight"].reshape(1, 1, Cin, -1)
    z = jax.lax.conv_general_dilated(
        y, w_pw, window_strides=(1, 1), padding="VALID",
        dimension_numbers=("NHWC", "HWIO", "NHWC"))
    g, b, m, v = params["pw_bn"]
    z = (z - m) / jnp.sqrt(v + eps) * g + b
    z = z * jax.nn.sigmoid(z)
    return jnp.transpose(z, (0, 3, 1, 2))


if __name__ == "__main__":
    key = jax.random.PRNGKey(0)
    k_x, k_p = jax.random.split(key)

    N, Cin, H, W = 2, 4, 16, 16
    Cout, ksize, stride = 8, 3, 1

    x = jax.random.normal(k_x, (N, Cin, H, W), jnp.float32)     # NCHW like PyTorch
    params = init_params(k_p, Cin, Cout, ksize)

    out = dwconv_forward(x, params, ksize=ksize, stride=stride, block_h=8)
    out = jax.block_until_ready(out)
    assert out.shape == (N, Cout, H, W), out.shape

    ref = jax.block_until_ready(_reference(x, params, ksize, stride))
    max_err = float(jnp.max(jnp.abs(out - ref)))
    assert max_err < 1e-3, f"max abs err vs reference: {max_err}"

    print("KERNEL_OK")
</pallas_src>

<mosaic_0001>
module attributes {stable_mosaic.version = 11 : i64} {
  func.func @_fused_dwconv_kernel(%arg0: i32, %arg1: i32, %arg2: memref<1x1x10x18x4xf32, #tpu.memory_space<vmem>>, %arg3: memref<3x3x4xf32, #tpu.memory_space<vmem>>, %arg4: memref<1x4xf32, #tpu.memory_space<vmem>>, %arg5: memref<4x8xf32, #tpu.memory_space<vmem>>, %arg6: memref<1x8xf32, #tpu.memory_space<vmem>>, %arg7: memref<1x8x16x8xf32, #tpu.memory_space<vmem>>) attributes {dimension_semantics = [#tpu.dimension_semantics<parallel>, #tpu.dimension_semantics<parallel>], iteration_bounds = array<i64: 2, 2>, scalar_prefetch = 0 : i64, scratch_operands = 0 : i64, tpu.core_type = #tpu.core_type<tc>, window_params = [{transform_indices = @transform_0, window_bounds = array<i64: 1, 1, 10, 18, 4>}, {pipeline_mode = #tpu.pipeline_mode<synchronous>, transform_indices = @transform_1, window_bounds = array<i64: 3, 3, 4>}, {pipeline_mode = #tpu.pipeline_mode<synchronous>, transform_indices = @transform_2, window_bounds = array<i64: 1, 4>}, {pipeline_mode = #tpu.pipeline_mode<synchronous>, transform_indices = @transform_3, window_bounds = array<i64: 4, 8>}, {pipeline_mode = #tpu.pipeline_mode<synchronous>, transform_indices = @transform_4, window_bounds = array<i64: 1, 8>}, {transform_indices = @transform_5, window_bounds = array<i64: 1, 8, 16, 8>}]} {
    %c0 = arith.constant 0 : index
    %c0_0 = arith.constant 0 : index
    %c0_1 = arith.constant 0 : index
    %c0_2 = arith.constant 0 : index
    %c0_3 = arith.constant 0 : index
    %0 = vector.load %arg2[%c0, %c0_0, %c0_1, %c0_2, %c0_3] : memref<1x1x10x18x4xf32, #tpu.memory_space<vmem>>, vector<1x1x10x18x4xf32>
    %1 = vector.shape_cast %0 : vector<1x1x10x18x4xf32> to vector<10x18x4xf32>
    %c0_4 = arith.constant 0 : index
    %c0_5 = arith.constant 0 : index
    %c0_6 = arith.constant 0 : index
    %2 = vector.load %arg3[%c0_4, %c0_5, %c0_6] : memref<3x3x4xf32, #tpu.memory_space<vmem>>, vector<3x3x4xf32>
    %cst = arith.constant 0.000000e+00 : f32
    %3 = vector.broadcast %cst : f32 to vector<8x16x4xf32>
    %4 = vector.extract_strided_slice %1 {offsets = [0, 0, 0], sizes = [8, 16, 4], strides = [1, 1, 1]} : vector<10x18x4xf32> to vector<8x16x4xf32>
    %5 = vector.extract_strided_slice %2 {offsets = [0, 0, 0], sizes = [1, 1, 4], strides = [1, 1, 1]} : vector<3x3x4xf32> to vector<1x1x4xf32>
    %6 = vector.shape_cast %5 : vector<1x1x4xf32> to vector<4xf32>
    %7 = vector.shape_cast %6 : vector<4xf32> to vector<1x1x4xf32>
    %8 = vector.broadcast %7 : vector<1x1x4xf32> to vector<8x16x4xf32>
    %9 = arith.mulf %4, %8 : vector<8x16x4xf32>
    %10 = arith.addf %3, %9 : vector<8x16x4xf32>
    %11 = vector.extract_strided_slice %1 {offsets = [0, 1, 0], sizes = [8, 16, 4], strides = [1, 1, 1]} : vector<10x18x4xf32> to vector<8x16x4xf32>
    %12 = vector.extract_strided_slice %2 {offsets = [0, 1, 0], sizes = [1, 1, 4], strides = [1, 1, 1]} : vector<3x3x4xf32> to vector<1x1x4xf32>
    %13 = vector.shape_cast %12 : vector<1x1x4xf32> to vector<4xf32>
    %14 = vector.shape_cast %13 : vector<4xf32> to vector<1x1x4xf32>
    %15 = vector.broadcast %14 : vector<1x1x4xf32> to vector<8x16x4xf32>
    %16 = arith.mulf %11, %15 : vector<8x16x4xf32>
    %17 = arith.addf %10, %16 : vector<8x16x4xf32>
    %18 = vector.extract_strided_slice %1 {offsets = [0, 2, 0], sizes = [8, 16, 4], strides = [1, 1, 1]} : vector<10x18x4xf32> to vector<8x16x4xf32>
    %19 = vector.extract_strided_slice %2 {offsets = [0, 2, 0], sizes = [1, 1, 4], strides = [1, 1, 1]} : vector<3x3x4xf32> to vector<1x1x4xf32>
    %20 = vector.shape_cast %19 : vector<1x1x4xf32> to vector<4xf32>
    %21 = vector.shape_cast %20 : vector<4xf32> to vector<1x1x4xf32>
    %22 = vector.broadcast %21 : vector<1x1x4xf32> to vector<8x16x4xf32>
    %23 = arith.mulf %18, %22 : vector<8x16x4xf32>
    %24 = arith.addf %17, %23 : vector<8x16x4xf32>
    %25 = vector.extract_strided_slice %1 {offsets = [1, 0, 0], sizes = [8, 16, 4], strides = [1, 1, 1]} : vector<10x18x4xf32> to vector<8x16x4xf32>
    %26 = vector.extract_strided_slice %2 {offsets = [1, 0, 0], sizes = [1, 1, 4], strides = [1, 1, 1]} : vector<3x3x4xf32> to vector<1x1x4xf32>
    %27 = vector.shape_cast %26 : vector<1x1x4xf32> to vector<4xf32>
    %28 = vector.shape_cast %27 : vector<4xf32> to vector<1x1x4xf32>
    %29 = vector.broadcast %28 : vector<1x1x4xf32> to vector<8x16x4xf32>
    %30 = arith.mulf %25, %29 : vector<8x16x4xf32>
    %31 = arith.addf %24, %30 : vector<8x16x4xf32>
    %32 = vector.extract_strided_slice %1 {offsets = [1, 1, 0], sizes = [8, 16, 4], strides = [1, 1, 1]} : vector<10x18x4xf32> to vector<8x16x4xf32>
    %33 = vector.extract_strided_slice %2 {offsets = [1, 1, 0], sizes = [1, 1, 4], strides = [1, 1, 1]} : vector<3x3x4xf32> to vector<1x1x4xf32>
    %34 = vector.shape_cast %33 : vector<1x1x4xf32> to vector<4xf32>
    %35 = vector.shape_cast %34 : vector<4xf32> to vector<1x1x4xf32>
    %36 = vector.broadcast %35 : vector<1x1x4xf32> to vector<8x16x4xf32>
    %37 = arith.mulf %32, %36 : vector<8x16x4xf32>
    %38 = arith.addf %31, %37 : vector<8x16x4xf32>
    %39 = vector.extract_strided_slice %1 {offsets = [1, 2, 0], sizes = [8, 16, 4], strides = [1, 1, 1]} : vector<10x18x4xf32> to vector<8x16x4xf32>
    %40 = vector.extract_strided_slice %2 {offsets = [1, 2, 0], sizes = [1, 1, 4], strides = [1, 1, 1]} : vector<3x3x4xf32> to vector<1x1x4xf32>
    %41 = vector.shape_cast %40 : vector<1x1x4xf32> to vector<4xf32>
    %42 = vector.shape_cast %41 : vector<4xf32> to vector<1x1x4xf32>
    %43 = vector.broadcast %42 : vector<1x1x4xf32> to vector<8x16x4xf32>
    %44 = arith.mulf %39, %43 : vector<8x16x4xf32>
    %45 = arith.addf %38, %44 : vector<8x16x4xf32>
    %46 = vector.extract_strided_slice %1 {offsets = [2, 0, 0], sizes = [8, 16, 4], strides = [1, 1, 1]} : vector<10x18x4xf32> to vector<8x16x4xf32>
    %47 = vector.extract_strided_slice %2 {offsets = [2, 0, 0], sizes = [1, 1, 4], strides = [1, 1, 1]} : vector<3x3x4xf32> to vector<1x1x4xf32>
    %48 = vector.shape_cast %47 : vector<1x1x4xf32> to vector<4xf32>
    %49 = vector.shape_cast %48 : vector<4xf32> to vector<1x1x4xf32>
    %50 = vector.broadcast %49 : vector<1x1x4xf32> to vector<8x16x4xf32>
    %51 = arith.mulf %46, %50 : vector<8x16x4xf32>
    %52 = arith.addf %45, %51 : vector<8x16x4xf32>
    %53 = vector.extract_strided_slice %1 {offsets = [2, 1, 0], sizes = [8, 16, 4], strides = [1, 1, 1]} : vector<10x18x4xf32> to vector<8x16x4xf32>
    %54 = vector.extract_strided_slice %2 {offsets = [2, 1, 0], sizes = [1, 1, 4], strides = [1, 1, 1]} : vector<3x3x4xf32> to vector<1x1x4xf32>
    %55 = vector.shape_cast %54 : vector<1x1x4xf32> to vector<4xf32>
    %56 = vector.shape_cast %55 : vector<4xf32> to vector<1x1x4xf32>
    %57 = vector.broadcast %56 : vector<1x1x4xf32> to vector<8x16x4xf32>
    %58 = arith.mulf %53, %57 : vector<8x16x4xf32>
    %59 = arith.addf %52, %58 : vector<8x16x4xf32>
    %60 = vector.extract_strided_slice %1 {offsets = [2, 2, 0], sizes = [8, 16, 4], strides = [1, 1, 1]} : vector<10x18x4xf32> to vector<8x16x4xf32>
    %61 = vector.extract_strided_slice %2 {offsets = [2, 2, 0], sizes = [1, 1, 4], strides = [1, 1, 1]} : vector<3x3x4xf32> to vector<1x1x4xf32>
    %62 = vector.shape_cast %61 : vector<1x1x4xf32> to vector<4xf32>
    %63 = vector.shape_cast %62 : vector<4xf32> to vector<1x1x4xf32>
    %64 = vector.broadcast %63 : vector<1x1x4xf32> to vector<8x16x4xf32>
    %65 = arith.mulf %60, %64 : vector<8x16x4xf32>
    %66 = arith.addf %59, %65 : vector<8x16x4xf32>
    %c0_7 = arith.constant 0 : index
    %c0_8 = arith.constant 0 : index
    %67 = vector.load %arg4[%c0_7, %c0_8] : memref<1x4xf32, #tpu.memory_space<vmem>>, vector<1x4xf32>
    %68 = vector.shape_cast %67 : vector<1x4xf32> to vector<1x1x4xf32>
    %69 = vector.broadcast %68 : vector<1x1x4xf32> to vector<8x16x4xf32>
    %70 = arith.addf %66, %69 : vector<8x16x4xf32>
    %71 = arith.negf %70 : vector<8x16x4xf32>
    %72 = math.exp %71 : vector<8x16x4xf32>
    %cst_9 = arith.constant 1.000000e+00 : f32
    %73 = vector.broadcast %cst_9 : f32 to vector<8x16x4xf32>
    %74 = arith.addf %73, %72 : vector<8x16x4xf32>
    %75 = arith.divf %73, %74 : vector<8x16x4xf32>
    %76 = arith.mulf %70, %75 : vector<8x16x4xf32>
    %77 = vector.shape_cast %76 : vector<8x16x4xf32> to vector<128x4xf32>
    %c0_10 = arith.constant 0 : index
    %c0_11 = arith.constant 0 : index
    %78 = vector.load %arg5[%c0_10, %c0_11] : memref<4x8xf32, #tpu.memory_space<vmem>>, vector<4x8xf32>
    %cst_12 = arith.constant dense<0.000000e+00> : vector<128x8xf32>
    %79 = tpu.matmul %77, %78, %cst_12 {dimension_numbers = #tpu.dot_dimension_numbers<[1], [0], [0], [1], [0, 0, 1, 1], [], []>} : vector<128x4xf32>, vector<4x8xf32>, vector<128x8xf32> -> vector<128x8xf32>
    %c0_13 = arith.constant 0 : index
    %c0_14 = arith.constant 0 : index
    %80 = vector.load %arg6[%c0_13, %c0_14] : memref<1x8xf32, #tpu.memory_space<vmem>>, vector<1x8xf32>
    %81 = vector.broadcast %80 : vector<1x8xf32> to vector<128x8xf32>
    %82 = arith.addf %79, %81 : vector<128x8xf32>
    %83 = arith.negf %82 : vector<128x8xf32>
    %84 = math.exp %83 : vector<128x8xf32>
    %cst_15 = arith.constant 1.000000e+00 : f32
    %85 = vector.broadcast %cst_15 : f32 to vector<128x8xf32>
    %86 = arith.addf %85, %84 : vector<128x8xf32>
    %87 = arith.divf %85, %86 : vector<128x8xf32>
    %88 = arith.mulf %82, %87 : vector<128x8xf32>
    %89 = vector.shape_cast %88 : vector<128x8xf32> to vector<8x16x8xf32>
    %c0_16 = arith.constant 0 : index
    %c0_17 = arith.constant 0 : index
    %c0_18 = arith.constant 0 : index
    %c0_19 = arith.constant 0 : index
    %90 = vector.load %arg7[%c0_16, %c0_17, %c0_18, %c0_19] : memref<1x8x16x8xf32, #tpu.memory_space<vmem>>, vector<1x8x16x8xf32>
    %91 = vector.shape_cast %90 : vector<1x8x16x8xf32> to vector<8x16x8xf32>
    %92 = vector.shape_cast %89 : vector<8x16x8xf32> to vector<1x8x16x8xf32>
    tpu.vector_store %arg7[%c0_16, %c0_17, %c0_18, %c0_19], %92 {strides = array<i32>} : memref<1x8x16x8xf32, #tpu.memory_space<vmem>>, vector<1x8x16x8xf32>,
    return
  }
  func.func @transform_0(%arg0: i32, %arg1: i32) -> (i32, i32, i32, i32, i32) {
    %c0_i32 = arith.constant 0 : i32
    %c0_i32_0 = arith.constant 0 : i32
    %c0_i32_1 = arith.constant 0 : i32
    %c0_i32_2 = arith.constant 0 : i32
    return %arg0, %arg1, %c0_i32, %c0_i32_0, %c0_i32_1 : i32, i32, i32, i32, i32
  }
  func.func @transform_1(%arg0: i32, %arg1: i32) -> (i32, i32, i32) {
    %c0_i32 = arith.constant 0 : i32
    %c0_i32_0 = arith.constant 0 : i32
    %c0_i32_1 = arith.constant 0 : i32
    %c0_i32_2 = arith.constant 0 : i32
    return %c0_i32, %c0_i32_0, %c0_i32_1 : i32, i32, i32
  }
  func.func @transform_2(%arg0: i32, %arg1: i32) -> (i32, i32) {
    %c0_i32 = arith.constant 0 : i32
    %c0_i32_0 = arith.constant 0 : i32
    %c0_i32_1 = arith.constant 0 : i32
    return %c0_i32, %c0_i32_0 : i32, i32
  }
  func.func @transform_3(%arg0: i32, %arg1: i32) -> (i32, i32) {
    %c0_i32 = arith.constant 0 : i32
    %c0_i32_0 = arith.constant 0 : i32
    %c0_i32_1 = arith.constant 0 : i32
    return %c0_i32, %c0_i32_0 : i32, i32
  }
  func.func @transform_4(%arg0: i32, %arg1: i32) -> (i32, i32) {
    %c0_i32 = arith.constant 0 : i32
    %c0_i32_0 = arith.constant 0 : i32
    %c0_i32_1 = arith.constant 0 : i32
    return %c0_i32, %c0_i32_0 : i32, i32
  }
  func.func @transform_5(%arg0: i32, %arg1: i32) -> (i32, i32, i32, i32) {
    %c0_i32 = arith.constant 0 : i32
    %c0_i32_0 = arith.constant 0 : i32
    %c0_i32_1 = arith.constant 0 : i32
    return %arg0, %arg1, %c0_i32, %c0_i32_0 : i32, i32, i32, i32
  }
}

</mosaic_0001>

<bundles_post_ra>
// kernel: tpu_custom_call.1
= control target key start
LH: loop header
LB: loop body
LE: loop exit
PB: predicated region body
PF: predicated region fallthrough
CT: control target
= control target key end

     0   :  { %s2075_s18 = smov 0   ;;  %s2077_s19 = smov 0   ;;  %s3210_s0 = inlined_call_operand.vmem [shape: f32[2,2,10,18,4], index: 0, kind: input, shape index: {}]   ;;  %s3211_s1 = inlined_call_operand.vmem [shape: f32[3,3,4], index: 1, kind: input, shape index: {}]   ;;  %s3212_s2 = inlined_call_operand.vmem [shape: f32[1,4], index: 2, kind: input, shape index: {}]   ;;  %s3213_s3 = inlined_call_operand.vmem [shape: f32[4,8], index: 3, kind: input, shape index: {}]   ;;  %s3214_s4 = inlined_call_operand.vmem [shape: f32[1,8], index: 4, kind: input, shape index: {}]   ;;  %s3215_s5 = inlined_call_operand.vmem [shape: f32[2,16,16,8], index: 5, kind: output, shape index: {}]  }
   0x1   :  { %s2079_s20 = smov 0   ;;  %s2081_s21 = smov 0  }
   0x2   :  { %s2083_s22 = smov 0  }
   0x3 LB: > { %s24_s23 = sadd.s32 1, %s2035_s20  ;;  %s27_s24 = sadd.s32 1, %s2039_s21  ;;  %s2043_s22 = sphi %s2083_s22, %s15_s22   ;;  %s2039_s21 = sphi %s2081_s21, %s3292_s21   ;;  %s2035_s20 = sphi %s2079_s20, %s3291_s20   ;;  %s2031_s19 = sphi %s2077_s19, %s3290_s19   ;;  %s2027_s18 = sphi %s2075_s18, %s3289_s18  }
   0x4   : > { %p25_p0 = scmp.ge.s32.totalorder %s24_s23, 2  ;;  %p1724_p1 = scmp.ge.s32.totalorder %s2043_s22, 1 }
   0x5   : > { %p207_p2 = scmp.lt.s32.totalorder %s2043_s22, 5 }
   0x6   : > { %s3294_s23 = smov (%p25_p0, %s24_s23), 0  ;;  %s3296_s24 = smov (!%p25_p0, %s27_s24), %s2039_s21 }
   0x7   : > { %p208_p3 = pnand %p1724_p1, %p207_p2  ;;  %p29_p4 = scmp.ge.s32.totalorder %s3296_s24, 2 }
   0x9   : > { %s3298_s24 = smov (%p29_p4, %s3296_s24), 0  ;;  %211 = sbr.rel (%p208_p3) target bundleno = 467 (0x1d3), region = 40 }
   0xe   : > { %v1286_v0 = vld [vmem:[%s3213_s3] sm:$0xf]  ;;  %vm1343_vm0 = vcmask 1043456   ;;  %p244_p5 = scmp.lt.s32.totalorder %s2031_s19, 1  ;;  %p246_p6 = scmp.lt.s32.totalorder %s2027_s18, 1  ;;  %v297_v1 = vlaneseq  ;;  %vm385_vm1 = vcmask 1046528  }
   0xf   : > { %1800 = vmatprep.subr.msk.mxu0 %vm1343_vm0, %v1286_v0  ;;  %1826 = vmatprep.subr.msk.mxu1 %vm1343_vm0, %v1286_v0  ;;  %v294_v3 = vld [vmem:[%s3211_s1] sm:$0x7]  ;;  %v295_v7 = vld [vmem:[%s3211_s1 + $0x4] sm:$0x7]  ;;  %v296_v8 = vld [vmem:[%s3211_s1 + $0x8] sm:$0x7] }
  0x10   : > { %1801 = vmatpush3.msk.msra.mxu0 %vm1343_vm0, %v1286_v0  ;;  %1827 = vmatpush3.msk.msra.mxu1 %vm1343_vm0, %v1286_v0  ;;  %s3300_s19 = smov (!%p244_p5, %s2031_s19), 1  ;;  %v298_v2 = vshrl.u32 %v297_v1, 7  ;;  %vm510_vm2 = vcmask 1045504   ;;  %vm1294_vm3 = vcmask 31744   ;;  %s1726_s29 = sshll.u32 %s2027_s18, 3  ;;  %vm1604_vm4 = vcmask 64512  }
  0x11   : > { %s247_s27 = scalar_select %p246_p6, %s2027_s18, 1 }
  0x12   : > { %s1829_s28 = smul.u32 60, %s3300_s19  ;;  %v299_v4 = vsub.s32 0, %v298_v2  ;;  %v335_v5 = vsub.s32 1, %v298_v2  ;;  %v460_v6 = vsub.s32 2, %v298_v2  ;;  %p256_p7 = scmp.lt.s32.totalorder %s1726_s29, 15 }
  0x13   : > { %s1828_s6 = smul.u32 30, %s247_s27 }
  0x14   : > { %v2124_v9 = vrot.slane %v294_v3, %v299_v4  ;;  %v2126_v10 = vrot.slane %v294_v3, %v335_v5  ;;  %v2128_v11 = vrot.slane %v294_v3, %v460_v6  ;;  %v2130_v12 = vrot.slane %v295_v7, %v299_v4  ;;  %s3302_s29 = smov (!%p256_p7, %s1726_s29), 15 }
  0x15   : > { %s250_s9 = sadd.s32 %s1829_s28, %s1828_s6  ;;  %v2132_v13 = vrot.slane %v295_v7, %v335_v5  ;;  %v2139_v14 = vrot.slane %v295_v7, %v460_v6  ;;  %v2145_v17 = vrot.slane %v296_v8, %v299_v4  ;;  %v2147_v18 = vrot.slane %v296_v8, %v335_v5  ;;  %s1727_s30 = sshll.u32 %s3302_s29, 1 }
  0x16   : > { %s1725_s12 = sshll.u32 %s250_s9, 3  ;;  %v2149_v19 = vrot.slane %v296_v8, %v460_v6  ;;  %s1728_s6 = sshll.u32 %s3300_s19, 5 }
  0x17   : > { %s2137_s15 = scalar_lea.vmem %s3210_s0, %s1725_s12  ;;  %s260_s7 = sadd.s32 %s1728_s6, %s1727_s30 }
  0x18   : > { %v264_v15 = vld [vmem:[%s2137_s15] sm:$0xff]  ;;  %v2143_v16 = vld [vmem:[%s2137_s15 + $0x8] sm:$0xff]  ;;  %v2152_v20 = vld [vmem:[%s2137_s15 + $0x18] sm:$0xff]  ;;  %s1729_s8 = sshll.u32 %s260_s7, 3 }
  0x19   : > { %v2155_v21 = vld [vmem:[%s2137_s15 + $0x20] sm:$0xff]  ;;  %v301_v22 = vmul.f32 %v2124_v9, %v264_v15  ;;  %v337_v23 = vmul.f32 %v2126_v10, %v264_v15  ;;  %v2161_v24 = vmul.f32 %v2126_v10, %v2143_v16  ;;  %v462_v25 = vmul.f32 %v2128_v11, %v264_v15  ;;  %v2180_v34 = vld [vmem:[%s2137_s15 + $0x30] sm:$0xff]  ;;  %v2199_v44 = vld [vmem:[%s2137_s15 + $0x38] sm:$0xff]  ;;  %s3149_s10 = scalar_lea.vmem %s3215_s5, %s1729_s8 }
  0x1a   : > { %v2166_v26 = vmul.f32 %v2128_v11, %v2143_v16  ;;  %v587_v27 = vmul.f32 %v2130_v12, %v2152_v20  ;;  %v623_v28 = vmul.f32 %v2132_v13, %v2152_v20  ;;  %v2174_v29 = vmul.f32 %v2132_v13, %v2155_v21  ;;  %v2196_v43 = vld [vmem:[%s2137_s15 + $0x60] sm:$0xff]  ;;  %v2209_v49 = vld [vmem:[%s2137_s15 + $0x68] sm:$0xff]  ;;  %v2235_v63 = vld [vmem:[%s2137_s15 + $0x78] sm:$0xff] }
  0x1b   : > { %v386_v30 = vrot.slane %v337_v23, 1  ;;  %v387_v31 = vrot.slane %v2161_v24, 1  ;;  %v511_v32 = vrot.slane %v462_v25, 2  ;;  %v747_v33 = vmul.f32 %v2139_v14, %v2152_v20  ;;  %3252 = vst [vmem:[#allocation2_spill] sm:$0xff] %v2235_v63  ;;  %v2253_v8 = vld [vmem:[%s2137_s15 + $0x80] sm:$0xff] }
  0x1c   : > { %v512_v35 = vrot.slane %v2166_v26, 2  ;;  %v671_v36 = vrot.slane %v623_v28, 1  ;;  %v672_v37 = vrot.slane %v2174_v29, 1  ;;  %v2186_v38 = vmul.f32 %v2139_v14, %v2155_v21 }
  0x1d   : > { %v388_v39 = vsel %vm385_vm1, %v386_v30, %v387_v31  ;;  %v795_v40 = vrot.slane %v747_v33, 2  ;;  %v871_v41 = vmul.f32 %v2145_v17, %v2180_v34  ;;  %v907_v42 = vmul.f32 %v2147_v18, %v2180_v34  ;;  %v2272_v33 = vld [vmem:[%s2137_s15 + $0x90] sm:$0xff] }
  0x1e   : > { %v442_v45 = vadd.f32 %v388_v39, %v301_v22  ;;  %v513_v46 = vsel %vm510_vm2, %v511_v32, %v512_v35  ;;  %v673_v47 = vsel %vm385_vm1, %v671_v36, %v672_v37  ;;  %v796_v48 = vrot.slane %v2186_v38, 2 }
  0x1f   : > { %v2213_v50 = vmul.f32 %v2147_v18, %v2199_v44  ;;  %v955_v51 = vrot.slane %v907_v42, 1  ;;  %v1031_v52 = vmul.f32 %v2149_v19, %v2180_v34  ;;  %v2219_v53 = vmul.f32 %v2149_v19, %v2199_v44  ;;  %v2278_v42 = vld [vmem:[%s2137_s15 + $0x98] sm:$0xff] }
  0x20   : > { %v567_v54 = vadd.f32 %v513_v46, %v442_v45  ;;  %v797_v55 = vsel %vm510_vm2, %v795_v40, %v796_v48  ;;  %v309_v56 = vmul.f32 %v2124_v9, %v2196_v43  ;;  %v349_v57 = vmul.f32 %v2126_v10, %v2196_v43 }
  0x21   : > { %v956_v58 = vrot.slane %v2213_v50, 1  ;;  %v1079_v59 = vrot.slane %v1031_v52, 2  ;;  %v1080_v60 = vrot.slane %v2219_v53, 2  ;;  %v2232_v61 = vmul.f32 %v2126_v10, %v2209_v49 }
  0x22   : > { %v603_v62 = vadd.f32 %v587_v27, %v567_v54  ;;  %v406_v0 = vrot.slane %v349_v57, 1  ;;  %v474_v1 = vmul.f32 %v2128_v11, %v2196_v43  ;;  %v2241_v2 = vmul.f32 %v2128_v11, %v2209_v49  ;;  %v266_v57 = vld [vmem:[%s2137_s15 + $0x10] sm:$0x3] }
  0x23   : > { %v957_v3 = vsel %vm385_vm1, %v955_v51, %v956_v58  ;;  %v1081_v4 = vsel %vm510_vm2, %v1079_v59, %v1080_v60  ;;  %v407_v5 = vrot.slane %v2232_v61, 1  ;;  %v595_v6 = vmul.f32 %v2130_v12, %v2235_v63 }
  0x24   : > { %v727_v7 = vadd.f32 %v673_v47, %v603_v62  ;;  %v531_v15 = vrot.slane %v474_v1, 2  ;;  %v532_v22 = vrot.slane %v2241_v2, 2  ;;  %v635_v23 = vmul.f32 %v2132_v13, %v2235_v63 }
  0x25   : > { %v408_v25 = vsel %vm385_vm1, %v406_v0, %v407_v5  ;;  %v2263_v27 = vmul.f32 %v2132_v13, %v2253_v8  ;;  %v759_v28 = vmul.f32 %v2139_v14, %v2235_v63  ;;  %v2269_v30 = vmul.f32 %v2139_v14, %v2253_v8 }
  0x26   : > { %v851_v32 = vadd.f32 %v797_v55, %v727_v7  ;;  %v450_v36 = vadd.f32 %v408_v25, %v309_v56  ;;  %v533_v39 = vsel %vm510_vm2, %v531_v15, %v532_v22  ;;  %v691_v40 = vrot.slane %v635_v23, 1  ;;  %v2307_v25 = vld [vmem:[%s3212_s2] ss:$0 sm:$0xff] }
  0x27   : > { %v692_v45 = vrot.slane %v2263_v27, 1  ;;  %v815_v46 = vrot.slane %v759_v28, 2  ;;  %v3218_v47 = vrot.slane %v2269_v30, 2  ;;  %v879_v51 = vmul.f32 %v2145_v17, %v2272_v33 }
  0x28   : > { %v887_v52 = vadd.f32 %v871_v41, %v851_v32  ;;  %v575_v54 = vadd.f32 %v533_v39, %v450_v36  ;;  %v919_v55 = vmul.f32 %v2147_v18, %v2272_v33  ;;  %v2288_v56 = vmul.f32 %v2147_v18, %v2278_v42 }
  0x29   : > { %v693_v59 = vsel %vm385_vm1, %v691_v40, %v692_v45  ;;  %v817_v62 = vsel %vm510_vm2, %v815_v46, %v3218_v47  ;;  %v1043_v41 = vmul.f32 %v2149_v19, %v2272_v33  ;;  %v2301_v0 = vmul.f32 %v2149_v19, %v2278_v42  ;;  %v2317_v46 = vld [vmem:[%s2137_s15 + $0x28] sm:$0x3] }
  0x2a   : > { %v1011_v1 = vadd.f32 %v957_v3, %v887_v52  ;;  %v611_v7 = vadd.f32 %v595_v6, %v575_v54  ;;  %v975_v15 = vrot.slane %v919_v55, 1  ;;  %v3217_v23 = vrot.slane %v2288_v56, 1 }
  0x2b   : > { %v1099_v28 = vrot.slane %v1043_v41, 2  ;;  %v3216_v32 = vrot.slane %v2301_v0, 2  ;;  %v302_v36 = vmul.f32 %v2124_v9, %v2143_v16  ;;  %v339_v39 = vmul.f32 %v2126_v10, %v266_v57 }
  0x2c   : > { %v1135_v40 = vadd.f32 %v1081_v4, %v1011_v1  ;;  %v735_v3 = vadd.f32 %v693_v59, %v611_v7  ;;  %v977_v6 = vsel %vm385_vm1, %v975_v15, %v3217_v23  ;;  %v464_v52 = vmul.f32 %v2128_v11, %v266_v57  ;;  %v2331_v1 = vld [vmem:[%s2137_s15 + $0x40] sm:$0x3]  ;;  %v2347_v23 = vld [vmem:[%s2137_s15 + $0x70] sm:$0x3] }
  0x2d   : > { %v1101_v54 = vsel %vm510_vm2, %v1099_v28, %v3216_v32  ;;  %v389_v55 = vrot.slane %v339_v39, 1  ;;  %v588_v16 = vmul.f32 %v2130_v12, %v2155_v21  ;;  %v625_v4 = vmul.f32 %v2132_v13, %v2317_v46  ;;  %3253 = vst [vmem:[#allocation3_spill] sm:$0xff] %v2331_v1  ;;  %3254 = vst [vmem:[#allocation4_spill] sm:$0xff] %v2347_v23 }
  0x2e   : > { %v2328_v59 = vadd.f32 %v2307_v25, %v1135_v40  ;;  %v859_v41 = vadd.f32 %v817_v62, %v735_v3  ;;  %v514_v7 = vrot.slane %v464_v52, 2  ;;  %v749_v57 = vmul.f32 %v2139_v14, %v2317_v46 }
  0x2f   : > { %v390_v15 = vsel %vm385_vm1, %v387_v31, %v389_v55  ;;  %v674_v28 = vrot.slane %v625_v4, 1  ;;  %v872_v39 = vmul.f32 %v2145_v17, %v2199_v44  ;;  %v909_v32 = vmul.f32 %v2147_v18, %v2331_v1 }
  0x30   : > { %v1731_v40 = vmul.f32 -1.442695, %v2328_v59  ;;  %v895_v62 = vadd.f32 %v879_v51, %v859_v41  ;;  %v443_v3 = vadd.f32 %v390_v15, %v302_v36  ;;  %v515_v52 = vsel %vm510_vm2, %v512_v35, %v514_v7 }
  0x31   : > { %v675_v24 = vsel %vm385_vm1, %v672_v37, %v674_v28  ;;  %v798_v31 = vrot.slane %v749_v57, 2  ;;  %v958_v55 = vrot.slane %v909_v32, 1  ;;  %v1033_v4 = vmul.f32 %v2149_v19, %v2331_v1  ;;  %v2382_v57 = vld [vmem:[%s2137_s15 + $0xa0] sm:$0x3] }
  0x32   : > { %1870 = vpow2.f32 %v1731_v40  ;;  %v1019_v47 = vadd.f32 %v977_v6, %v895_v62  ;;  %v568_v51 = vadd.f32 %v515_v52, %v443_v3  ;;  %v310_v26 = vmul.f32 %v2124_v9, %v2209_v49  ;;  %v2365_v6 = vld [vmem:[%s2137_s15 + $0x88] sm:$0x3] }
  0x33   : > { %v799_v35 = vsel %vm510_vm2, %v796_v48, %v798_v31  ;;  %v959_v29 = vsel %vm385_vm1, %v956_v58, %v958_v55  ;;  %v1082_v37 = vrot.slane %v1033_v4, 2  ;;  %v351_v32 = vmul.f32 %v2126_v10, %v2347_v23  ;;  %3255 = vst [vmem:[#allocation5_spill] sm:$0xff] %v2365_v6 }
  0x34   : > { %v1143_v36 = vadd.f32 %v1101_v54, %v1019_v47  ;;  %v604_v41 = vadd.f32 %v588_v16, %v568_v51  ;;  %v476_v7 = vmul.f32 %v2128_v11, %v2347_v23  ;;  %v596_v38 = vmul.f32 %v2130_v12, %v2253_v8 }
  0x35   : > { %v1083_v48 = vsel %vm510_vm2, %v1080_v60, %v1082_v37  ;;  %v409_v50 = vrot.slane %v351_v32, 1  ;;  %v637_v58 = vmul.f32 %v2132_v13, %v2365_v6  ;;  %v761_v47 = vmul.f32 %v2139_v14, %v2365_v6 }
  0x36   : > { %v2379_v54 = vadd.f32 %v2307_v25, %v1143_v36  ;;  %v728_v16 = vadd.f32 %v675_v24, %v604_v41  ;;  %v534_v15 = vrot.slane %v476_v7, 2  ;;  %v880_v28 = vmul.f32 %v2145_v17, %v2278_v42 }
  0x37   : > { %v410_v53 = vsel %vm385_vm1, %v407_v5, %v409_v50  ;;  %v694_v60 = vrot.slane %v637_v58, 1  ;;  %v818_v40 = vrot.slane %v761_v47, 2  ;;  %v921_v62 = vmul.f32 %v2147_v18, %v2382_v57 }
  0x38   : > { %v1739_v3 = vmul.f32 -1.442695, %v2379_v54  ;;  %v852_v52 = vadd.f32 %v799_v35, %v728_v16  ;;  %v451_v31 = vadd.f32 %v410_v53, %v310_v26  ;;  %v535_v24 = vsel %vm510_vm2, %v532_v22, %v534_v15 }
  0x39   : > { %v695_v55 = vsel %vm385_vm1, %v692_v45, %v694_v60  ;;  %v3256_v61 = vrot.slane %v2269_v30, 2  ;;  %v978_v4 = vrot.slane %v921_v62, 1  ;;  %v1045_v51 = vmul.f32 %v2149_v19, %v2382_v57 }
  0x3a   : > { %1872 = vpow2.f32 %v1739_v3  ;;  %v888_v37 = vadd.f32 %v872_v39, %v852_v52  ;;  %v576_v35 = vadd.f32 %v535_v24, %v451_v31  ;;  %v303_v2 = vmul.f32 %v2124_v9, %v2152_v20 }
  0x3b   : > { %v819_v5 = vsel %vm510_vm2, %v3256_v61, %v818_v40  ;;  %v3257_v22 = vrot.slane %v2288_v56, 1  ;;  %v1102_v26 = vrot.slane %v1045_v51, 2  ;;  %v340_v30 = vmul.f32 %v2126_v10, %v2152_v20 }
  0x3c   : > { %v2412_v45 = vmul.f32 %v2126_v10, %v2155_v21  ;;  %v1012_v32 = vadd.f32 %v959_v29, %v888_v37  ;;  %v612_v36 = vadd.f32 %v596_v38, %v576_v35  ;;  %v465_v39 = vmul.f32 %v2128_v11, %v2152_v20  ;;  %v2451_v37 = vld [vmem:[%s2137_s15 + $0x48] sm:$0xff] }
  0x3d   : > { %v979_v27 = vsel %vm385_vm1, %v3257_v22, %v978_v4  ;;  %v2418_v41 = vmul.f32 %v2128_v11, %v2155_v21  ;;  %v3258_v56 = vrot.slane %v2301_v0, 2  ;;  %v391_v50 = vrot.slane %v340_v30, 1 }
  0x3e   : > { %v392_v58 = vrot.slane %v2412_v45, 1  ;;  %v589_v47 = vmul.f32 %v2130_v12, %v2180_v34  ;;  %v1136_v16 = vadd.f32 %v1083_v48, %v1012_v32  ;;  %v736_v29 = vadd.f32 %v695_v55, %v612_v36  ;;  %v2460_v32 = vld [vmem:[%s2137_s15 + $0x50] sm:$0xff] }
  0x3f   : > { %v1103_v7 = vsel %vm510_vm2, %v3258_v56, %v1102_v26  ;;  %v516_v38 = vrot.slane %v465_v39, 2  ;;  %v3228_v15 = vrot.slane %v2418_v41, 2  ;;  %v1871_v20 = vpop.eup %1870  ;;  %v626_v0 = vmul.f32 %v2132_v13, %v2180_v34 }
  0x40   : > { %v393_v53 = vsel %vm385_vm1, %v391_v50, %v392_v58  ;;  %v2434_v60 = vmul.f32 %v2132_v13, %v2199_v44  ;;  %v750_v48 = vmul.f32 %v2139_v14, %v2180_v34  ;;  %v1222_v40 = vadd.f32 1.0, %v1871_v20 }
  0x41   : > { %v2439_v62 = vadd.f32 %v2307_v25, %v1136_v16  ;;  %v860_v3 = vadd.f32 %v819_v5, %v736_v29  ;;  %v444_v52 = vadd.f32 %v393_v53, %v303_v2  ;;  %v518_v31 = vsel %vm510_vm2, %v516_v38, %v3228_v15 }
  0x42   : > { %v676_v24 = vrot.slane %v626_v0, 1  ;;  %v3224_v55 = vrot.slane %v2434_v60, 1  ;;  %v2447_v61 = vmul.f32 %v2139_v14, %v2199_v44  ;;  %1874 = vrcp.f32 %v1222_v40 }
  0x43   : > { %v1732_v4 = vmul.f32 -1.442695, %v2439_v62  ;;  %v896_v51 = vadd.f32 %v880_v28, %v860_v3  ;;  %v569_v5 = vadd.f32 %v518_v31, %v444_v52  ;;  %v800_v2 = vrot.slane %v750_v48, 2 }
  0x44   : > { %v678_v35 = vsel %vm385_vm1, %v676_v24, %v3224_v55  ;;  %v3222_v22 = vrot.slane %v2447_v61, 2  ;;  %v873_v26 = vmul.f32 %v2145_v17, %v2451_v37  ;;  %v910_v28 = vmul.f32 %v2147_v18, %v2451_v37 }
  0x45   : > { %1876 = vpow2.f32 %v1732_v4  ;;  %v1020_v30 = vadd.f32 %v979_v27, %v896_v51  ;;  %v605_v36 = vadd.f32 %v589_v47, %v569_v5  ;;  %v2469_v56 = vmul.f32 %v2147_v18, %v2460_v32 }
  0x46   : > { %v802_v39 = vsel %vm510_vm2, %v800_v2, %v3222_v22  ;;  %v1034_v50 = vmul.f32 %v2149_v19, %v2451_v37  ;;  %v2475_v27 = vmul.f32 %v2149_v19, %v2460_v32  ;;  %v960_v29 = vrot.slane %v910_v28, 1 }
  0x47   : > { %v1144_v16 = vadd.f32 %v1103_v7, %v1020_v30  ;;  %v729_v47 = vadd.f32 %v678_v35, %v605_v36  ;;  %v311_v38 = vmul.f32 %v2124_v9, %v2235_v63  ;;  %v1873_v20 = vpop.eup %1872  ;;  %v3221_v53 = vrot.slane %v2469_v56, 1 }
  0x48   : > { %v1084_v0 = vrot.slane %v1034_v50, 2  ;;  %v3220_v48 = vrot.slane %v2475_v27, 2  ;;  %v352_v40 = vmul.f32 %v2126_v10, %v2235_v63  ;;  %v1230_v3 = vadd.f32 1.0, %v1873_v20 }
  0x49   : > { %v2484_v52 = vadd.f32 %v2307_v25, %v1144_v16  ;;  %v853_v7 = vadd.f32 %v802_v39, %v729_v47  ;;  %v2488_v31 = vmul.f32 %v2126_v10, %v2253_v8  ;;  %v962_v24 = vsel %vm385_vm1, %v960_v29, %v3221_v53  ;;  %v2516_v29 = vld [vmem:[%s2137_s15 + $0xa8] sm:$0xff] }
  0x4a   : > { %v1086_v4 = vsel %vm510_vm2, %v1084_v0, %v3220_v48  ;;  %v411_v51 = vrot.slane %v352_v40, 1  ;;  %v477_v5 = vmul.f32 %v2128_v11, %v2235_v63  ;;  %1878 = vrcp.f32 %v1230_v3  ;;  %3259 = vst [vmem:[#allocation6_spill] sm:$0xff] %v2516_v29 }
  0x4b   : > { %v1740_v35 = vmul.f32 -1.442695, %v2484_v52  ;;  %v889_v2 = vadd.f32 %v873_v26, %v853_v7  ;;  %v3219_v30 = vrot.slane %v2488_v31, 1  ;;  %v2502_v36 = vmul.f32 %v2128_v11, %v2253_v8 }
  0x4c   : > { %v536_v28 = vrot.slane %v477_v5, 2  ;;  %v597_v39 = vmul.f32 %v2130_v12, %v2272_v33  ;;  %v638_v50 = vmul.f32 %v2132_v13, %v2272_v33  ;;  %v2513_v47 = vmul.f32 %v2132_v13, %v2278_v42  ;;  %v2522_v5 = vld [vmem:[%s2137_s15 + $0xb0] sm:$0xff] }
  0x4d   : > { %1880 = vpow2.f32 %v1740_v35  ;;  %v1013_v16 = vadd.f32 %v962_v24, %v889_v2  ;;  %v413_v26 = vsel %vm385_vm1, %v411_v51, %v3219_v30  ;;  %v3223_v0 = vrot.slane %v2502_v36, 2 }
  0x4e   : > { %v452_v20 = vadd.f32 %v413_v26, %v311_v38  ;;  %v696_v40 = vrot.slane %v638_v50, 1  ;;  %v762_v3 = vmul.f32 %v2139_v14, %v2272_v33  ;;  %v3225_v24 = vrot.slane %v2513_v47, 1 }
  0x4f   : > { %v1137_v7 = vadd.f32 %v1086_v4, %v1013_v16  ;;  %v2527_v51 = vmul.f32 %v2139_v14, %v2278_v42  ;;  %v881_v35 = vmul.f32 %v2145_v17, %v2516_v29  ;;  %v1875_v2 = vpop.eup %1874  ;;  %v538_v38 = vsel %vm510_vm2, %v536_v28, %v3223_v0 }
  0x50   : > { %v820_v50 = vrot.slane %v762_v3, 2  ;;  %v922_v4 = vmul.f32 %v2147_v18, %v2516_v29  ;;  %v2538_v16 = vmul.f32 %v2147_v18, %v2522_v5  ;;  %v1270_v26 = vmul.f32 %v1875_v2, %v2328_v59 }
  0x51   : > { %v2542_v30 = vadd.f32 %v2307_v25, %v1137_v7  ;;  %v577_v48 = vadd.f32 %v538_v38, %v452_v20  ;;  %v698_v53 = vsel %vm385_vm1, %v696_v40, %v3225_v24  ;;  %v3227_v28 = vrot.slane %v2527_v51, 2 }
  0x52   : > { %v1877_v22 = vpop.eup %1876  ;;  %v980_v3 = vrot.slane %v922_v4, 1  ;;  %v3226_v0 = vrot.slane %v2538_v16, 1  ;;  %v1046_v55 = vmul.f32 %v2149_v19, %v2516_v29  ;;  %1802 = vmatprep.mubr.msk.f32.mxu0 %vm1294_vm3, %v1270_v26  ;;  %v2555_v20 = vmul.f32 %v2149_v19, %v2522_v5 }
  0x53   : > { %v1223_v59 = vadd.f32 1.0, %v1877_v22  ;;  %v1733_v7 = vmul.f32 -1.442695, %v2542_v30  ;;  %v613_v2 = vadd.f32 %v597_v39, %v577_v48  ;;  %v822_v40 = vsel %vm510_vm2, %v820_v50, %v3227_v28 }
  0x54   : > { %v982_v38 = vsel %vm385_vm1, %v980_v3, %v3226_v0  ;;  %v1104_v4 = vrot.slane %v1046_v55, 2  ;;  %v304_v22 = vmul.f32 %v2124_v9, %v2155_v21  ;;  %v3229_v48 = vrot.slane %v2555_v20, 2 }
  0x55   : > { %1882 = vrcp.f32 %v1223_v59  ;;  %v737_v26 = vadd.f32 %v698_v53, %v613_v2  ;;  %v342_v39 = vmul.f32 %v2126_v10, %v2317_v46  ;;  %v467_v24 = vmul.f32 %v2128_v11, %v2317_v46  ;;  %v2578_v53 = vld [vmem:[%s2137_s15 + $0x58] sm:$0x3] }
  0x56   : > { %1884 = vpow2.f32 %v1733_v7  ;;  %v590_v50 = vmul.f32 %v2130_v12, %v2199_v44  ;;  %v628_v55 = vmul.f32 %v2132_v13, %v2331_v1  ;;  %v1106_v21 = vsel %vm510_vm2, %v1104_v4, %v3229_v48  ;;  %3260 = vst [vmem:[#allocation7_spill] sm:$0xff] %v2578_v53 }
  0x57   : > { %v861_v3 = vadd.f32 %v822_v40, %v737_v26  ;;  %v394_v59 = vrot.slane %v342_v39, 1  ;;  %v752_v7 = vmul.f32 %v2139_v14, %v2331_v1  ;;  %v1879_v2 = vpop.eup %1878  ;;  %v519_v0 = vrot.slane %v467_v24, 2 }
  0x58   : > { %v679_v46 = vrot.slane %v628_v55, 1  ;;  %v874_v28 = vmul.f32 %v2145_v17, %v2460_v32  ;;  %v912_v15 = vmul.f32 %v2147_v18, %v2578_v53  ;;  %v1278_v40 = vmul.f32 %v1879_v2, %v2379_v54 }
  0x59   : > { %v897_v26 = vadd.f32 %v881_v35, %v861_v3  ;;  %v395_v4 = vsel %vm385_vm1, %v392_v58, %v394_v59  ;;  %v803_v39 = vrot.slane %v752_v7, 2  ;;  %v3261_v23 = vrot.slane %v2418_v41, 2 }
  0x5a   : > { %v1881_v48 = vpop.eup %1880  ;;  %v445_v63 = vadd.f32 %v395_v4, %v304_v22  ;;  %v3262_v55 = vrot.slane %v2434_v60, 1  ;;  %v963_v29 = vrot.slane %v912_v15, 1  ;;  %1814 = vmatprep.mubr.msk.f32.mxu1 %vm1294_vm3, %v1278_v40  ;;  %v3263_v45 = vrot.slane %v2447_v61, 2 }
  0x5b   : > { %v520_v24 = vsel %vm510_vm2, %v3261_v23, %v519_v0  ;;  %v1231_v54 = vadd.f32 1.0, %v1881_v48  ;;  %v1021_v35 = vadd.f32 %v982_v38, %v897_v26  ;;  %v1036_v22 = vmul.f32 %v2149_v19, %v2578_v53 }
  0x5c   : > { %v680_v1 = vsel %vm385_vm1, %v3262_v55, %v679_v46  ;;  %v804_v58 = vsel %vm510_vm2, %v3263_v45, %v803_v39  ;;  %v570_v3 = vadd.f32 %v520_v24, %v445_v63  ;;  %v3264_v41 = vrot.slane %v2469_v56, 1  ;;  %v2630_v55 = vld [vmem:[%s2137_s15 + $0xb8] sm:$0x3] }
  0x5d   : > { %v312_v60 = vmul.f32 %v2124_v9, %v2253_v8  ;;  %v354_v15 = vmul.f32 %v2126_v10, %v2365_v6  ;;  %1886 = vrcp.f32 %v1231_v54  ;;  %v1145_v0 = vadd.f32 %v1106_v21, %v1021_v35 }
  0x5e   : > { %v964_v23 = vsel %vm385_vm1, %v3264_v41, %v963_v29  ;;  %v1087_v61 = vrot.slane %v1036_v22, 2  ;;  %v479_v38 = vmul.f32 %v2128_v11, %v2365_v6  ;;  %v606_v48 = vadd.f32 %v590_v50, %v570_v3 }
  0x5f   : > { %v414_v59 = vrot.slane %v354_v15, 1  ;;  %v598_v63 = vmul.f32 %v2130_v12, %v2278_v42  ;;  %v640_v56 = vmul.f32 %v2132_v13, %v2382_v57  ;;  %v2616_v29 = vadd.f32 %v2307_v25, %v1145_v0 }
  0x60   : > { %v3265_v7 = vrot.slane %v2475_v27, 2  ;;  %v539_v2 = vrot.slane %v479_v38, 2  ;;  %v764_v46 = vmul.f32 %v2139_v14, %v2382_v57  ;;  %v730_v40 = vadd.f32 %v680_v1, %v606_v48 }
  0x61   : > { %v3266_v50 = vrot.slane %v2488_v31, 1  ;;  %v699_v4 = vrot.slane %v640_v56, 1  ;;  %v882_v39 = vmul.f32 %v2145_v17, %v2522_v5  ;;  %v1741_v24 = vmul.f32 -1.442695, %v2616_v29 }
  0x62   : > { %v1088_v21 = vsel %vm510_vm2, %v3265_v7, %v1087_v61  ;;  %v3267_v54 = vrot.slane %v2502_v36, 2  ;;  %v823_v45 = vrot.slane %v764_v46, 2  ;;  %v1883_v22 = vpop.eup %1882  ;;  %v854_v1 = vadd.f32 %v804_v58, %v730_v40 }
  0x63   : > { %v415_v26 = vsel %vm385_vm1, %v3266_v50, %v414_v59  ;;  %v3268_v31 = vrot.slane %v2513_v47, 1  ;;  %v924_v41 = vmul.f32 %v2147_v18, %v2630_v55  ;;  %v1048_v15 = vmul.f32 %v2149_v19, %v2630_v55  ;;  %v1885_v0 = vpop.eup %1884 }
  0x64   : > { %v453_v27 = vadd.f32 %v415_v26, %v312_v60  ;;  %v540_v35 = vsel %vm510_vm2, %v3267_v54, %v539_v2  ;;  %v1271_v60 = vmul.f32 %v1883_v22, %v2439_v62  ;;  %1888 = vpow2.f32 %v1741_v24 }
  0x65   : > { %v700_v3 = vsel %vm385_vm1, %v3268_v31, %v699_v4  ;;  %v3269_v61 = vrot.slane %v2527_v51, 2  ;;  %v1224_v58 = vadd.f32 1.0, %v1885_v0  ;;  %v890_v48 = vadd.f32 %v874_v28, %v854_v1 }
  0x66   : > { %v578_v36 = vadd.f32 %v540_v35, %v453_v27  ;;  %v983_v47 = vrot.slane %v924_v41, 1  ;;  %v1107_v59 = vrot.slane %v1048_v15, 2  ;;  %1803 = vmatmul.mubr.msk.f32.vlgmr.msra.gmra.mxu0 %vm1294_vm3, %v1271_v60  ;;  %v305_v7 = vmul.f32 %v2124_v9, %v2180_v34 }
  0x67   : > { %v824_v38 = vsel %vm510_vm2, %v3269_v61, %v823_v45  ;;  %v343_v2 = vmul.f32 %v2126_v10, %v2180_v34  ;;  %v2653_v62 = vmul.f32 %v2126_v10, %v2199_v44  ;;  %1890 = vrcp.f32 %v1224_v58 }
  0x68   : > { %v614_v56 = vadd.f32 %v598_v63, %v578_v36  ;;  %v1014_v51 = vadd.f32 %v964_v23, %v890_v48  ;;  %v3270_v46 = vrot.slane %v2538_v16, 1  ;;  %v3271_v40 = vrot.slane %v2555_v20, 2 }
  0x69   : > { %v396_v26 = vrot.slane %v343_v2, 1  ;;  %v397_v4 = vrot.slane %v2653_v62, 1  ;;  %v468_v24 = vmul.f32 %v2128_v11, %v2180_v34  ;;  %v2666_v54 = vmul.f32 %v2128_v11, %v2199_v44 }
  0x6a   : > { %v984_v28 = vsel %vm385_vm1, %v3270_v46, %v983_v47  ;;  %v1108_v63 = vsel %vm510_vm2, %v3271_v40, %v1107_v59  ;;  %v738_v50 = vadd.f32 %v700_v3, %v614_v56  ;;  %v1138_v27 = vadd.f32 %v1088_v21, %v1014_v51  ;;  %v1887_v21 = vpop.eup %1886 }
  0x6b   : > { %v591_v16 = vmul.f32 %v2130_v12, %v2451_v37  ;;  %v629_v20 = vmul.f32 %v2132_v13, %v2451_v37  ;;  %v398_v35 = vsel %vm385_vm1, %v396_v26, %v397_v4  ;;  %v521_v45 = vrot.slane %v468_v24, 2 }
  0x6c   : > { %v862_v23 = vadd.f32 %v824_v38, %v738_v50  ;;  %v2677_v34 = vmul.f32 %v2132_v13, %v2460_v32  ;;  %v2680_v22 = vadd.f32 %v2307_v25, %v1138_v27  ;;  %v446_v1 = vadd.f32 %v398_v35, %v305_v7 }
  0x6d   : > { %v3248_v31 = vrot.slane %v2666_v54, 2  ;;  %v681_v3 = vrot.slane %v629_v20, 1  ;;  %v1279_v41 = vmul.f32 %v1887_v21, %v2484_v52  ;;  %v753_v60 = vmul.f32 %v2139_v14, %v2451_v37 }
  0x6e   : > { %v898_v15 = vadd.f32 %v882_v39, %v862_v23  ;;  %v3247_v0 = vrot.slane %v2677_v34, 1  ;;  %v1734_v36 = vmul.f32 -1.442695, %v2680_v22  ;;  %v2693_v38 = vmul.f32 %v2139_v14, %v2460_v32 }
  0x6f   : > { %v523_v61 = vsel %vm510_vm2, %v521_v45, %v3248_v31  ;;  %v875_v58 = vmul.f32 %v2145_v17, %v2196_v43  ;;  %1815 = vmatmul.mubr.msk.f32.vlgmr.msra.gmra.mxu1 %vm1294_vm3, %v1279_v41  ;;  %v805_v47 = vrot.slane %v753_v60, 2  ;;  %v913_v56 = vmul.f32 %v2147_v18, %v2196_v43 }
  0x70   : > { %v1022_v52 = vadd.f32 %v984_v28, %v898_v15  ;;  %v571_v39 = vadd.f32 %v523_v61, %v446_v1  ;;  %v683_v48 = vsel %vm385_vm1, %v681_v3, %v3247_v0  ;;  %1892 = vpow2.f32 %v1734_v36 }
  0x71   : > { %v3246_v59 = vrot.slane %v2693_v38, 2  ;;  %v2706_v7 = vmul.f32 %v2147_v18, %v2209_v49  ;;  %v1037_v46 = vmul.f32 %v2149_v19, %v2196_v43  ;;  %v2712_v28 = vmul.f32 %v2149_v19, %v2209_v49  ;;  %v1889_v40 = vpop.eup %1888 }
  0x72   : > { %v1146_v2 = vadd.f32 %v1108_v63, %v1022_v52  ;;  %v607_v51 = vadd.f32 %v591_v16, %v571_v39  ;;  %v965_v26 = vrot.slane %v913_v56, 1  ;;  %v313_v27 = vmul.f32 %v2124_v9, %v2272_v33 }
  0x73   : > { %v807_v50 = vsel %vm510_vm2, %v805_v47, %v3246_v59  ;;  %v3245_v24 = vrot.slane %v2706_v7, 1  ;;  %v1232_v63 = vadd.f32 1.0, %v1889_v40  ;;  %v1089_v23 = vrot.slane %v1037_v46, 2  ;;  %v2758_v40 = vld [vmem:[%s2137_s15 + $0xc0] sm:$0xff] }
  0x74   : > { %v2721_v16 = vadd.f32 %v2307_v25, %v1146_v2  ;;  %v731_v20 = vadd.f32 %v683_v48, %v607_v51  ;;  %v3241_v45 = vrot.slane %v2712_v28, 2  ;;  %v355_v21 = vmul.f32 %v2126_v10, %v2272_v33  ;;  %v1891_v3 = vpop.eup %1890 }
  0x75   : > { %v967_v35 = vsel %vm385_vm1, %v965_v26, %v3245_v24  ;;  %v2731_v1 = vmul.f32 %v2126_v10, %v2278_v42  ;;  %1894 = vrcp.f32 %v1232_v63  ;;  %v480_v60 = vmul.f32 %v2128_v11, %v2272_v33 }
  0x76   : > { %v1742_v41 = vmul.f32 -1.442695, %v2721_v16  ;;  %v855_v15 = vadd.f32 %v807_v50, %v731_v20  ;;  %v1272_v36 = vmul.f32 %v1891_v3, %v2542_v30  ;;  %v1091_v61 = vsel %vm510_vm2, %v1089_v23, %v3241_v45  ;;  %v3272_v30 = vld [vmem:[#allocation6_spill] sm:$0xff] }
  0x77   : > { %v416_v52 = vrot.slane %v355_v21, 1  ;;  %v3240_v39 = vrot.slane %v2731_v1, 1  ;;  %v2743_v47 = vmul.f32 %v2128_v11, %v2278_v42  ;;  %v541_v56 = vrot.slane %v480_v60, 2 }
  0x78   : > { %1896 = vpow2.f32 %v1742_v41  ;;  %v891_v48 = vadd.f32 %v875_v58, %v855_v15  ;;  %1805 = vmatprep.mubr.msk.f32.mxu0 %vm1294_vm3, %v1272_v36  ;;  %v599_v2 = vmul.f32 %v2130_v12, %v3272_v30  ;;  %v641_v51 = vmul.f32 %v2132_v13, %v3272_v30 }
  0x79   : > { %v418_v33 = vsel %vm385_vm1, %v416_v52, %v3240_v39  ;;  %v2755_v58 = vmul.f32 %v2132_v13, %v2522_v5  ;;  %v3239_v26 = vrot.slane %v2743_v47, 2  ;;  %v765_v63 = vmul.f32 %v2139_v14, %v3272_v30 }
  0x7a   : > { %v1015_v46 = vadd.f32 %v967_v35, %v891_v48  ;;  %v454_v50 = vadd.f32 %v418_v33, %v313_v27  ;;  %v701_v20 = vrot.slane %v641_v51, 1  ;;  %v2766_v21 = vmul.f32 %v2139_v14, %v2522_v5  ;;  %v2771_v35 = vld [vmem:[%s2137_s15 + $0xc8] sm:$0xff] }
  0x7b   : > { %v3238_v23 = vrot.slane %v2755_v58, 1  ;;  %v883_v3 = vmul.f32 %v2145_v17, %v2758_v40  ;;  %v543_v27 = vsel %vm510_vm2, %v541_v56, %v3239_v26  ;;  %v825_v15 = vrot.slane %v765_v63, 2 }
  0x7c   : > { %v1139_v41 = vadd.f32 %v1091_v61, %v1015_v46  ;;  %v925_v60 = vmul.f32 %v2147_v18, %v2758_v40  ;;  %v579_v36 = vadd.f32 %v543_v27, %v454_v50  ;;  %v3243_v48 = vrot.slane %v2766_v21, 2 }
  0x7d   : > { %v703_v52 = vsel %vm385_vm1, %v701_v20, %v3238_v23  ;;  %v2784_v61 = vmul.f32 %v2147_v18, %v2771_v35  ;;  %v1893_v33 = vpop.eup %1892  ;;  %v1049_v46 = vmul.f32 %v2149_v19, %v2758_v40  ;;  %v2793_v50 = vmul.f32 %v2149_v19, %v2771_v35 }
  0x7e   : > { %v2787_v51 = vadd.f32 %v2307_v25, %v1139_v41  ;;  %v985_v56 = vrot.slane %v925_v60, 1  ;;  %v1225_v63 = vadd.f32 1.0, %v1893_v33  ;;  %v615_v20 = vadd.f32 %v599_v2, %v579_v36  ;;  %v3273_v36 = vld [vmem:[#allocation3_spill] sm:$0xff] }
  0x7f   : > { %v827_v27 = vsel %vm510_vm2, %v825_v15, %v3243_v48  ;;  %v3242_v23 = vrot.slane %v2784_v61, 1  ;;  %v1109_v41 = vrot.slane %v1049_v46, 2  ;;  %v3244_v60 = vrot.slane %v2793_v50, 2 }
  0x80   : > { %v1735_v26 = vmul.f32 -1.442695, %v2787_v51  ;;  %v306_v39 = vmul.f32 %v2124_v9, %v2199_v44  ;;  %1898 = vrcp.f32 %v1225_v63  ;;  %v739_v45 = vadd.f32 %v703_v52, %v615_v20 }
  0x81   : > { %v987_v2 = vsel %vm385_vm1, %v985_v56, %v3242_v23  ;;  %v345_v33 = vmul.f32 %v2126_v10, %v3273_v36  ;;  %v1111_v15 = vsel %vm510_vm2, %v1109_v41, %v3244_v60  ;;  %v470_v46 = vmul.f32 %v2128_v11, %v3273_v36  ;;  %v3274_v60 = vld [vmem:[#allocation4_spill] sm:$0xff] }
  0x82   : > { %1900 = vpow2.f32 %v1735_v26  ;;  %v592_v44 = vmul.f32 %v2130_v12, %v2460_v32  ;;  %v1895_v63 = vpop.eup %1894  ;;  %v863_v52 = vadd.f32 %v827_v27, %v739_v45  ;;  %v631_v56 = vmul.f32 %v2132_v13, %v2578_v53 }
  0x83   : > { %v399_v20 = vrot.slane %v345_v33, 1  ;;  %v755_v23 = vmul.f32 %v2139_v14, %v2578_v53  ;;  %v1280_v26 = vmul.f32 %v1895_v63, %v2616_v29  ;;  %v524_v48 = vrot.slane %v470_v46, 2 }
  0x84   : > { %v876_v41 = vmul.f32 %v2145_v17, %v2209_v49  ;;  %v915_v36 = vmul.f32 %v2147_v18, %v3274_v60  ;;  %v899_v59 = vadd.f32 %v883_v3, %v863_v52  ;;  %v684_v27 = vrot.slane %v631_v56, 1 }
  0x85   : > { %v1897_v24 = vpop.eup %1896  ;;  %v400_v45 = vsel %vm385_vm1, %v397_v4, %v399_v20  ;;  %v808_v33 = vrot.slane %v755_v23, 2  ;;  %1817 = vmatprep.mubr.msk.f32.mxu1 %vm1294_vm3, %v1280_v26  ;;  %v3275_v29 = vrot.slane %v2666_v54, 2  ;;  %v3276_v53 = vrot.slane %v2677_v34, 1 }
  0x86   : > { %v1233_v0 = vadd.f32 1.0, %v1897_v24  ;;  %v447_v31 = vadd.f32 %v400_v45, %v306_v39  ;;  %v968_v63 = vrot.slane %v915_v36, 1  ;;  %v1023_v6 = vadd.f32 %v987_v2, %v899_v59 }
  0x87   : > { %v525_v46 = vsel %vm510_vm2, %v3275_v29, %v524_v48  ;;  %v685_v3 = vsel %vm385_vm1, %v3276_v53, %v684_v27  ;;  %v3277_v62 = vrot.slane %v2693_v38, 2  ;;  %v1039_v23 = vmul.f32 %v2149_v19, %v3274_v60 }
  0x88   : > { %1902 = vrcp.f32 %v1233_v0  ;;  %v572_v24 = vadd.f32 %v525_v46, %v447_v31  ;;  %v3278_v39 = vrot.slane %v2706_v7, 1  ;;  %v314_v59 = vmul.f32 %v2124_v9, %v2278_v42 }
  0x89   : > { %v809_v4 = vsel %vm510_vm2, %v3277_v62, %v808_v33  ;;  %v1147_v34 = vadd.f32 %v1111_v15, %v1023_v6  ;;  %v1092_v48 = vrot.slane %v1039_v23, 2  ;;  %v357_v53 = vmul.f32 %v2126_v10, %v2382_v57 }
  0x8a   : > { %v969_v54 = vsel %vm385_vm1, %v3278_v39, %v968_v63  ;;  %v482_v38 = vmul.f32 %v2128_v11, %v2382_v57  ;;  %v608_v2 = vadd.f32 %v592_v44, %v572_v24  ;;  %v600_v31 = vmul.f32 %v2130_v12, %v2522_v5  ;;  %v2861_v44 = vld [vmem:[%s2137_s15 + $0xd0] sm:$0x3] }
  0x8b   : > { %v643_v0 = vmul.f32 %v2132_v13, %v2630_v55  ;;  %v767_v7 = vmul.f32 %v2139_v14, %v2630_v55  ;;  %v2855_v42 = vadd.f32 %v2307_v25, %v1147_v34  ;;  %v3279_v6 = vrot.slane %v2712_v28, 2 }
  0x8c   : > { %v419_v15 = vrot.slane %v357_v53, 1  ;;  %v544_v52 = vrot.slane %v482_v38, 2  ;;  %v732_v57 = vadd.f32 %v685_v3, %v608_v2  ;;  %v884_v26 = vmul.f32 %v2145_v17, %v2771_v35 }
  0x8d   : > { %v1093_v60 = vsel %vm510_vm2, %v3279_v6, %v1092_v48  ;;  %v704_v20 = vrot.slane %v643_v0, 1  ;;  %v828_v56 = vrot.slane %v767_v7, 2  ;;  %v1743_v36 = vmul.f32 -1.442695, %v2855_v42  ;;  %v1899_v46 = vpop.eup %1898 }
  0x8e   : > { %v3280_v45 = vrot.slane %v2731_v1, 1  ;;  %v3281_v28 = vrot.slane %v2743_v47, 2  ;;  %v927_v29 = vmul.f32 %v2147_v18, %v2861_v44  ;;  %v856_v63 = vadd.f32 %v809_v4, %v732_v57 }
  0x8f   : > { %v3282_v62 = vrot.slane %v2755_v58, 1  ;;  %v3283_v24 = vrot.slane %v2766_v21, 2  ;;  %v1901_v39 = vpop.eup %1900  ;;  %v1273_v34 = vmul.f32 %v1899_v46, %v2680_v22  ;;  %1904 = vpow2.f32 %v1743_v36 }
  0x90   : > { %v420_v27 = vsel %vm385_vm1, %v3280_v45, %v419_v15  ;;  %v545_v33 = vsel %vm510_vm2, %v3281_v28, %v544_v52  ;;  %v988_v47 = vrot.slane %v927_v29, 1  ;;  %v1051_v48 = vmul.f32 %v2149_v19, %v2861_v44 }
  0x91   : > { %v455_v3 = vadd.f32 %v420_v27, %v314_v59  ;;  %v705_v23 = vsel %vm385_vm1, %v3282_v62, %v704_v20  ;;  %v829_v1 = vsel %vm510_vm2, %v3283_v24, %v828_v56  ;;  %v1226_v53 = vadd.f32 1.0, %v1901_v39  ;;  %1806 = vmatmul.mubr.msk.f32.gmra.mxu0 %vm1294_vm3, %v1273_v34  ;;  %v2930_v39 = vld [vmem:[%s2137_s15 + $0x68] sm:$0xff] }
  0x92   : > { %v892_v38 = vadd.f32 %v876_v41, %v856_v63  ;;  %v307_v58 = vmul.f32 %v2124_v9, %v2451_v37  ;;  %v3284_v21 = vrot.slane %v2784_v61, 1  ;;  %v1112_v2 = vrot.slane %v1051_v48, 2  ;;  %v3286_v48 = vld [vmem:[#allocation2_spill] sm:$0xff] }
  0x93   : > { %v580_v4 = vadd.f32 %v545_v33, %v455_v3  ;;  %v346_v22 = vmul.f32 %v2126_v10, %v2451_v37  ;;  %v2893_v0 = vmul.f32 %v2126_v10, %v2460_v32  ;;  %1906 = vrcp.f32 %v1226_v53 }
  0x94   : > { %v989_v59 = vsel %vm385_vm1, %v3284_v21, %v988_v47  ;;  %v1016_v41 = vadd.f32 %v969_v54, %v892_v38  ;;  %v471_v6 = vmul.f32 %v2128_v11, %v2451_v37  ;;  %v3285_v15 = vrot.slane %v2793_v50, 2 }
  0x95   : > { %v616_v7 = vadd.f32 %v600_v31, %v580_v4  ;;  %v401_v52 = vrot.slane %v346_v22, 1  ;;  %v402_v57 = vrot.slane %v2893_v0, 1  ;;  %v2903_v20 = vmul.f32 %v2128_v11, %v2460_v32  ;;  %v1903_v31 = vpop.eup %1902  ;;  %v2000_v22 = vld [vmem:[%s2137_s15 + $0x78] sm:$0xff] }
  0x96   : > { %v1113_v61 = vsel %vm510_vm2, %v3285_v15, %v1112_v2  ;;  %v1140_v56 = vadd.f32 %v1093_v60, %v1016_v41  ;;  %v526_v45 = vrot.slane %v471_v6, 2  ;;  %v593_v54 = vmul.f32 %v2130_v12, %v2196_v43 }
  0x97   : > { %v740_v36 = vadd.f32 %v705_v23, %v616_v7  ;;  %v403_v37 = vsel %vm385_vm1, %v401_v52, %v402_v57  ;;  %v527_v50 = vrot.slane %v2903_v20, 2  ;;  %v632_v27 = vmul.f32 %v2132_v13, %v2196_v43  ;;  %v1998_v23 = vld [vmem:[%s2137_s15 + $0x60] sm:$0xff] }
  0x98   : > { %v2915_v60 = vmul.f32 %v2132_v13, %v2209_v49  ;;  %v1281_v28 = vmul.f32 %v1903_v31, %v2721_v16  ;;  %v2919_v33 = vadd.f32 %v2307_v25, %v1140_v56  ;;  %v448_v46 = vadd.f32 %v403_v37, %v307_v58 }
  0x99   : > { %v864_v29 = vadd.f32 %v829_v1, %v740_v36  ;;  %v528_v63 = vsel %vm510_vm2, %v526_v45, %v527_v50  ;;  %v686_v3 = vrot.slane %v632_v27, 1  ;;  %v756_v43 = vmul.f32 %v1998_v23, %v2139_v14 }
  0x9a   : > { %v687_v62 = vrot.slane %v2915_v60, 1  ;;  %1818 = vmatmul.mubr.msk.f32.gmra.mxu1 %vm1294_vm3, %v1281_v28  ;;  %v1736_v49 = vmul.f32 -1.442695, %v2919_v33  ;;  %v573_v24 = vadd.f32 %v528_v63, %v448_v46  ;;  %v2934_v1 = vmul.f32 %v2930_v39, %v2139_v14 }
  0x9b   : > { %v900_v16 = vadd.f32 %v884_v26, %v864_v29  ;;  %v810_v47 = vrot.slane %v756_v43, 2  ;;  %v877_v53 = vmul.f32 %v2145_v17, %v3286_v48  ;;  %v916_v38 = vmul.f32 %v2147_v18, %v3286_v48  ;;  %v291_v48 = vld [vmem:[%s2137_s15 + $0xd8] sm:$0xff] }
  0x9c   : > { %v688_v34 = vsel %vm385_vm1, %v686_v3, %v687_v62  ;;  %1908 = vpow2.f32 %v1736_v49  ;;  %v609_v4 = vadd.f32 %v593_v54, %v573_v24  ;;  %v811_v58 = vrot.slane %v2934_v1, 2  ;;  %v1905_v6 = vpop.eup %1904 }
  0x9d   : > { %v1024_v26 = vadd.f32 %v989_v59, %v900_v16  ;;  %v2946_v21 = vmul.f32 %v2147_v18, %v2253_v8  ;;  %v970_v2 = vrot.slane %v916_v38, 1  ;;  %v1040_v41 = vmul.f32 %v2000_v22, %v2149_v19  ;;  %v3006_v22 = vld [vmem:[%s2137_s15 + $0xe0] sm:$0xff] }
  0x9e   : > { %v2952_v7 = vmul.f32 %v2149_v19, %v2253_v8  ;;  %v733_v52 = vadd.f32 %v688_v34, %v609_v4  ;;  %v812_v59 = vsel %vm510_vm2, %v810_v47, %v811_v58  ;;  %v315_v56 = vmul.f32 %v2124_v9, %v3272_v30 }
  0x9f   : > { %v1148_v15 = vadd.f32 %v1113_v61, %v1024_v26  ;;  %v1234_v36 = vadd.f32 1.0, %v1905_v6  ;;  %v971_v45 = vrot.slane %v2946_v21, 1  ;;  %v1094_v54 = vrot.slane %v1040_v41, 2 }
  0xa0   : > { %v1095_v31 = vrot.slane %v2952_v7, 2  ;;  %v857_v8 = vadd.f32 %v812_v59, %v733_v52  ;;  %v358_v61 = vmul.f32 %v2126_v10, %v3272_v30  ;;  %v2968_v27 = vmul.f32 %v2126_v10, %v2522_v5  ;;  %v1907_v28 = vpop.eup %1906 }
  0xa1   : > { %v2962_v37 = vadd.f32 %v2307_v25, %v1148_v15  ;;  %1910 = vrcp.f32 %v1234_v36  ;;  %v972_v29 = vsel %vm385_vm1, %v970_v2, %v971_v45  ;;  %v483_v46 = vmul.f32 %v2128_v11, %v3272_v30 }
  0xa2   : > { %v1096_v25 = vsel %vm510_vm2, %v1094_v54, %v1095_v31  ;;  %v1274_v63 = vmul.f32 %v1907_v28, %v2787_v51  ;;  %v893_v23 = vadd.f32 %v877_v53, %v857_v8  ;;  %v421_v43 = vrot.slane %v358_v61, 1 }
  0xa3   : > { %v1744_v3 = vmul.f32 -1.442695, %v2962_v37  ;;  %v422_v49 = vrot.slane %v2968_v27, 1  ;;  %v2983_v16 = vmul.f32 %v2128_v11, %v2522_v5  ;;  %v546_v24 = vrot.slane %v483_v46, 2 }
  0xa4   : > { %v601_v34 = vmul.f32 %v2130_v12, %v2758_v40  ;;  %1808 = vmatprep.mubr.msk.f32.mxu0 %vm1294_vm3, %v1274_v63  ;;  %v1017_v30 = vadd.f32 %v972_v29, %v893_v23  ;;  %v644_v51 = vmul.f32 %v2132_v13, %v2758_v40  ;;  %v2992_v47 = vmul.f32 %v2132_v13, %v2771_v35 }
  0xa5   : > { %1912 = vpow2.f32 %v1744_v3  ;;  %v423_v53 = vsel %vm385_vm1, %v421_v43, %v422_v49  ;;  %v547_v38 = vrot.slane %v2983_v16, 2  ;;  %v768_v26 = vmul.f32 %v2139_v14, %v2758_v40  ;;  %v3016_v40 = vld [vmem:[%s3212_s2] ss:$0 sm:$0xff] }
  0xa6   : > { %v3003_v4 = vmul.f32 %v2139_v14, %v2771_v35  ;;  %v1141_v2 = vadd.f32 %v1096_v25, %v1017_v30  ;;  %v456_v41 = vadd.f32 %v423_v53, %v315_v56  ;;  %v706_v6 = vrot.slane %v644_v51, 1 }
  0xa7   : > { %v707_v15 = vrot.slane %v2992_v47, 1  ;;  %v548_v52 = vsel %vm510_vm2, %v546_v24, %v547_v38  ;;  %v830_v59 = vrot.slane %v768_v26, 2  ;;  %v928_v56 = vmul.f32 %v2147_v18, %v291_v48  ;;  %v3287_v26 = vld [vmem:[#allocation7_spill] sm:$0xff] }
  0xa8   : > { %v831_v36 = vrot.slane %v3003_v4, 2  ;;  %v3019_v54 = vadd.f32 %v3016_v40, %v1141_v2  ;;  %v581_v8 = vadd.f32 %v548_v52, %v456_v41  ;;  %v3027_v29 = vmul.f32 %v2147_v18, %v3006_v22 }
  0xa9   : > { %v1909_v61 = vpop.eup %1908  ;;  %v708_v28 = vsel %vm385_vm1, %v706_v6, %v707_v15  ;;  %v1052_v25 = vmul.f32 %v2149_v19, %v291_v48  ;;  %v3032_v46 = vmul.f32 %v2149_v19, %v3006_v22  ;;  %v885_v24 = vmul.f32 %v2145_v17, %v291_v48 }
  0xaa   : > { %v1227_v63 = vadd.f32 1.0, %v1909_v61  ;;  %v1737_v3 = vmul.f32 -1.442695, %v3019_v54  ;;  %v617_v23 = vadd.f32 %v601_v34, %v581_v8  ;;  %v832_v43 = vsel %vm510_vm2, %v830_v59, %v831_v36  ;;  %v2002_v61 = vld [vmem:[%s2137_s15 + $0x70] sm:$0x3] }
  0xab   : > { %v990_v30 = vrot.slane %v928_v56, 1  ;;  %v991_v51 = vrot.slane %v3027_v29, 1  ;;  %v348_v2 = vmul.f32 %v2126_v10, %v3287_v26  ;;  %v473_v41 = vmul.f32 %v2128_v11, %v3287_v26 }
  0xac   : > { %1914 = vrcp.f32 %v1227_v63  ;;  %v741_v53 = vadd.f32 %v708_v28, %v617_v23  ;;  %v1114_v34 = vrot.slane %v1052_v25, 2  ;;  %v1115_v6 = vrot.slane %v3032_v46, 2 }
  0xad   : > { %1916 = vpow2.f32 %v1737_v3  ;;  %v308_v52 = vmul.f32 %v2124_v9, %v2460_v32  ;;  %v404_v8 = vrot.slane %v348_v2, 1  ;;  %v529_v56 = vrot.slane %v473_v41, 2  ;;  %v3288_v3 = vld [vmem:[#allocation5_spill] sm:$0xff] }
  0xae   : > { %v1911_v59 = vpop.eup %1910  ;;  %v865_v48 = vadd.f32 %v832_v43, %v741_v53  ;;  %v634_v28 = vmul.f32 %v2002_v61, %v2132_v13  ;;  %v992_v23 = vsel %vm385_vm1, %v990_v30, %v991_v51  ;;  %v758_v25 = vmul.f32 %v2002_v61, %v2139_v14 }
  0xaf   : > { %v1282_v63 = vmul.f32 %v1911_v59, %v2855_v42  ;;  %v918_v26 = vmul.f32 %v2147_v18, %v3288_v3  ;;  %v405_v43 = vsel %vm385_vm1, %v402_v57, %v404_v8  ;;  %v530_v53 = vsel %vm510_vm2, %v527_v50, %v529_v56  ;;  %v2003_v8 = vld [vmem:[%s2137_s15 + $0x88] sm:$0x3] }
  0xb0   : > { %v901_v32 = vadd.f32 %v885_v24, %v865_v48  ;;  %v689_v42 = vrot.slane %v634_v28, 1  ;;  %v1116_v30 = vsel %vm510_vm2, %v1114_v34, %v1115_v6  ;;  %v449_v41 = vadd.f32 %v405_v43, %v308_v52 }
  0xb1   : > { %1820 = vmatprep.mubr.msk.f32.mxu1 %vm1294_vm3, %v1282_v63  ;;  %v594_v24 = vmul.f32 %v2930_v39, %v2130_v12  ;;  %v813_v59 = vrot.slane %v758_v25, 2  ;;  %v973_v50 = vrot.slane %v918_v26, 1  ;;  %v1042_v56 = vmul.f32 %v2003_v8, %v2149_v19 }
  0xb2   : > { %v1913_v2 = vpop.eup %1912  ;;  %v1025_v48 = vadd.f32 %v992_v23, %v901_v32  ;;  %v574_v57 = vadd.f32 %v530_v53, %v449_v41  ;;  %v690_v20 = vsel %vm385_vm1, %v687_v62, %v689_v42  ;;  %v360_v52 = vmul.f32 %v2126_v10, %v2630_v55 }
  0xb3   : > { %v1235_v0 = vadd.f32 1.0, %v1913_v2  ;;  %v485_v39 = vmul.f32 %v2128_v11, %v2630_v55  ;;  %v814_v60 = vsel %vm510_vm2, %v811_v58, %v813_v59  ;;  %v316_v62 = vmul.f32 %v2124_v9, %v2522_v5  ;;  %v2004_v55 = vld [vmem:[%s2137_s15 + $0x80] sm:$0xff]  ;;  %v293_v58 = vld [vmem:[%s2137_s15 + $0xe8] sm:$0x3] }
  0xb4   : > { %v1149_v34 = vadd.f32 %v1116_v30, %v1025_v48  ;;  %v610_v61 = vadd.f32 %v594_v24, %v574_v57  ;;  %v646_v28 = vmul.f32 %v2132_v13, %v2861_v44  ;;  %v424_v23 = vrot.slane %v360_v52, 1 }
  0xb5   : > { %1918 = vrcp.f32 %v1235_v0  ;;  %v549_v25 = vrot.slane %v485_v39, 2  ;;  %v770_v10 = vmul.f32 %v2139_v14, %v2861_v44  ;;  %v878_v1 = vmul.f32 %v2004_v55, %v2145_v17 }
  0xb6   : > { %v3085_v63 = vadd.f32 %v3016_v40, %v1149_v34  ;;  %v734_v11 = vadd.f32 %v690_v20, %v610_v61  ;;  %v1097_v3 = vrot.slane %v1042_v56, 2  ;;  %v425_v9 = vsel %vm385_vm1, %v422_v49, %v424_v23 }
  0xb7   : > { %v550_v13 = vsel %vm510_vm2, %v547_v38, %v549_v25  ;;  %v709_v5 = vrot.slane %v646_v28, 1  ;;  %v974_v14 = vsel %vm385_vm1, %v971_v45, %v973_v50  ;;  %v457_v44 = vadd.f32 %v425_v9, %v316_v62  ;;  %v3138_v62 = vld [vmem:[%s3214_s4] ss:$0 sm:$0xff] }
  0xb8   : > { %v1745_v26 = vmul.f32 -1.442695, %v3085_v63  ;;  %v858_v43 = vadd.f32 %v814_v60, %v734_v11  ;;  %v602_v53 = vmul.f32 %v2130_v12, %v2771_v35  ;;  %v833_v49 = vrot.slane %v770_v10, 2 }
  0xb9   : > { %v1915_v32 = vpop.eup %1914  ;;  %v930_v16 = vmul.f32 %v2147_v18, %v293_v58  ;;  %v582_v30 = vadd.f32 %v550_v13, %v457_v44  ;;  %v1098_v21 = vsel %vm510_vm2, %v1095_v31, %v1097_v3  ;;  %v710_v12 = vsel %vm385_vm1, %v707_v15, %v709_v5 }
  0xba   : > { %v1917_v42 = vpop.eup %1916  ;;  %v1275_v27 = vmul.f32 %v1915_v32, %v2919_v33  ;;  %1920 = vpow2.f32 %v1745_v26  ;;  %v894_v38 = vadd.f32 %v878_v1, %v858_v43  ;;  %v1054_v35 = vmul.f32 %v2149_v19, %v293_v58 }
  0xbb   : > { %v1228_v2 = vadd.f32 1.0, %v1917_v42  ;;  %v618_v45 = vadd.f32 %v602_v53, %v582_v30  ;;  %v834_v18 = vsel %vm510_vm2, %v831_v36, %v833_v49  ;;  %v993_v41 = vrot.slane %v930_v16, 1 }
  0xbc   : > { %1809 = vmatmul.mubr.msk.f32.gmra.mxu0 %vm1294_vm3, %v1275_v27  ;;  %v1018_v33 = vadd.f32 %v974_v14, %v894_v38  ;;  %v886_v7 = vmul.f32 %v2145_v17, %v3006_v22  ;;  %v1117_v31 = vrot.slane %v1054_v35, 2 }
  0xbd   : > { %1922 = vrcp.f32 %v1228_v2  ;;  %v742_v59 = vadd.f32 %v710_v12, %v618_v45  ;;  %v994_v48 = vsel %vm385_vm1, %v991_v51, %v993_v41 }
  0xbe   : > { %v1142_v24 = vadd.f32 %v1098_v21, %v1018_v33  ;;  %v1118_v36 = vsel %vm510_vm2, %v1115_v6, %v1117_v31 }
  0xbf   : > { %v866_v15 = vadd.f32 %v834_v18, %v742_v59 }
  0xc0   : > { %v1165_v47 = vadd.f32 %v3016_v40, %v1142_v24 }
  0xc1   : > { %v902_v57 = vadd.f32 %v886_v7, %v866_v15 }
  0xc2   : > { %v1919_v0 = vpop.eup %1918  ;;  %v1738_v4 = vmul.f32 -1.442695, %v1165_v47 }
  0xc3   : > { %v1283_v19 = vmul.f32 %v1919_v0, %v2962_v37  ;;  %v1026_v17 = vadd.f32 %v994_v48, %v902_v57 }
  0xc4   : > { %1924 = vpow2.f32 %v1738_v4 }
  0xc5   : > { %1821 = vmatmul.mubr.msk.f32.gmra.mxu1 %vm1294_vm3, %v1283_v19  ;;  %v1150_v20 = vadd.f32 %v1118_v36, %v1026_v17 }
  0xc7   : > { %v1921_v22 = vpop.eup %1920  ;;  %v1173_v8 = vadd.f32 %v3016_v40, %v1150_v20 }
  0xc8   : > { %v1236_v50 = vadd.f32 1.0, %v1921_v22 }
  0xc9   : > { %v1746_v51 = vmul.f32 -1.442695, %v1173_v8 }
  0xca   : > { %v1923_v37 = vpop.eup %1922  ;;  %1926 = vrcp.f32 %v1236_v50 }
  0xcb   : > { %v1276_v29 = vmul.f32 %v1923_v37, %v3019_v54  ;;  %1928 = vpow2.f32 %v1746_v51 }
  0xcd   : > { %1811 = vmatprep.mubr.msk.f32.mxu0 %vm1294_vm3, %v1276_v29 }
  0xd1   : > { %v1925_v56 = vpop.eup %1924 }
  0xd2   : > { %v1229_v34 = vadd.f32 1.0, %v1925_v56 }
  0xd4   : > { %1930 = vrcp.f32 %v1229_v34 }
  0xd7   : > { %v1927_v46 = vpop.eup %1926 }
  0xd8   : > { %v1284_v6 = vmul.f32 %v1927_v46, %v3085_v63  ;;  %v1929_v52 = vpop.eup %1928 }
  0xd9   : > { %v1237_v39 = vadd.f32 1.0, %v1929_v52 }
  0xda   : > { %1823 = vmatprep.mubr.msk.f32.mxu1 %vm1294_vm3, %v1284_v6 }
  0xdb   : > { %1932 = vrcp.f32 %v1237_v39 }
  0xe1   : > { %v1931_v40 = vpop.eup %1930 }
  0xe2   : > { %v1277_v61 = vmul.f32 %v1931_v40, %v1165_v47 }
  0xe4   : > { %1812 = vmatmul.mubr.msk.f32.gmra.mxu0 %vm1294_vm3, %v1277_v61 }
  0xe8   : > { %v1933_v54 = vpop.eup %1932 }
  0xe9   : > { %v1285_v60 = vmul.f32 %v1933_v54, %v1173_v8 }
  0xeb   : > { %1824 = vmatmul.mubr.msk.f32.gmra.mxu1 %vm1294_vm3, %v1285_v60 }
 0x126   : > { %v1804_v28 = vpop.f32.mrf.mxu0 }
 0x127   : > { %v1419_v63 = vadd.f32 %v1804_v28, %v3138_v62 }
 0x128   : > { %v1413_v23 = vpop.f32.mrf.mxu0 }
 0x129   : > { %v1766_v25 = vmul.f32 -1.442695, %v1419_v63  ;;  %v1414_v10 = vadd.f32 %v3138_v62, %v1413_v23 }
 0x12b   : > { %1934 = vpow2.f32 %v1766_v25  ;;  %v1765_v11 = vmul.f32 -1.442695, %v1414_v10 }
 0x12d   : > { %1936 = vpow2.f32 %v1765_v11 }
 0x12f   : > { %v1816_v55 = vpop.f32.mrf.mxu1 }
 0x130   : > { %v1459_v1 = vadd.f32 %v1816_v55, %v3138_v62 }
 0x131   : > { %v1453_v3 = vpop.f32.mrf.mxu1 }
 0x132   : > { %v1774_v58 = vmul.f32 -1.442695, %v1459_v1  ;;  %v1454_v26 = vadd.f32 %v3138_v62, %v1453_v3 }
 0x134   : > { %1938 = vpow2.f32 %v1774_v58  ;;  %v1773_v9 = vmul.f32 -1.442695, %v1454_v26 }
 0x136   : > { %1940 = vpow2.f32 %v1773_v9 }
 0x138   : > { %v1935_v13 = vpop.eup %1934 }
 0x139   : > { %v1541_v5 = vadd.f32 1.0, %v1935_v13 }
 0x13a   : > { %v1937_v32 = vpop.eup %1936 }
 0x13b   : > { %1942 = vrcp.f32 %v1541_v5  ;;  %v1540_v43 = vadd.f32 1.0, %v1937_v32 }
 0x13d   : > { %1944 = vrcp.f32 %v1540_v43 }
 0x141   : > { %v1939_v14 = vpop.eup %1938 }
 0x142   : > { %v1549_v44 = vadd.f32 1.0, %v1939_v14 }
 0x143   : > { %v1941_v53 = vpop.eup %1940 }
 0x144   : > { %1946 = vrcp.f32 %v1549_v44  ;;  %v1548_v42 = vadd.f32 1.0, %v1941_v53 }
 0x146   : > { %1948 = vrcp.f32 %v1548_v42 }
 0x148   : > { %v1943_v27 = vpop.eup %1942 }
 0x149   : > { %v1589_v49 = vmul.f32 %v1943_v27, %v1419_v63 }
 0x14a   : > { %v1945_v16 = vpop.eup %1944 }
 0x14b   : > { %1606 = vst.msk [vmem:[%s3149_s10 + $0x8] sm:$0xff] %vm1604_vm4, %v1589_v49  ;;  %v1588_v2 = vmul.f32 %v1945_v16, %v1414_v10 }
 0x14d   : > { %1605 = vst.msk [vmem:[%s3149_s10] sm:$0xff] %vm1604_vm4, %v1588_v2 }
 0x151   : > { %v1807_v38 = vpop.f32.mrf.mxu0  ;;  %v1947_v30 = vpop.eup %1946 }
 0x152   : > { %v1429_v21 = vadd.f32 %v1807_v38, %v3138_v62  ;;  %v1597_v12 = vmul.f32 %v1947_v30, %v1459_v1 }
 0x153   : > { %v1423_v35 = vpop.f32.mrf.mxu0  ;;  %v1949_v33 = vpop.eup %1948 }
 0x154   : > { %v1768_v45 = vmul.f32 -1.442695, %v1429_v21  ;;  %v1424_v18 = vadd.f32 %v3138_v62, %v1423_v35  ;;  %1614 = vst.msk [vmem:[%s3149_s10 + $0x48] sm:$0xff] %vm1604_vm4, %v1597_v12  ;;  %v1596_v41 = vmul.f32 %v1949_v33, %v1454_v26 }
 0x156   : > { %1950 = vpow2.f32 %v1768_v45  ;;  %v1767_v24 = vmul.f32 -1.442695, %v1424_v18  ;;  %1613 = vst.msk [vmem:[%s3149_s10 + $0x40] sm:$0xff] %vm1604_vm4, %v1596_v41 }
 0x158   : > { %1952 = vpow2.f32 %v1767_v24 }
 0x15a   : > { %v1819_v59 = vpop.f32.mrf.mxu1 }
 0x15b   : > { %v1469_v7 = vadd.f32 %v1819_v59, %v3138_v62 }
 0x15c   : > { %v1463_v31 = vpop.f32.mrf.mxu1 }
 0x15d   : > { %v1776_v0 = vmul.f32 -1.442695, %v1469_v7  ;;  %v1464_v47 = vadd.f32 %v3138_v62, %v1463_v31 }
 0x15f   : > { %1954 = vpow2.f32 %v1776_v0  ;;  %v1775_v15 = vmul.f32 -1.442695, %v1464_v47 }
 0x161   : > { %1956 = vpow2.f32 %v1775_v15 }
 0x163   : > { %v1951_v19 = vpop.eup %1950 }
 0x164   : > { %v1543_v48 = vadd.f32 1.0, %v1951_v19 }
 0x165   : > { %v1953_v4 = vpop.eup %1952 }
 0x166   : > { %1958 = vrcp.f32 %v1543_v48  ;;  %v1542_v57 = vadd.f32 1.0, %v1953_v4 }
 0x168   : > { %1960 = vrcp.f32 %v1542_v57 }
 0x16c   : > { %v1955_v36 = vpop.eup %1954 }
 0x16d   : > { %v1551_v17 = vadd.f32 1.0, %v1955_v36 }
 0x16e   : > { %v1957_v22 = vpop.eup %1956 }
 0x16f   : > { %1962 = vrcp.f32 %v1551_v17  ;;  %v1550_v20 = vadd.f32 1.0, %v1957_v22 }
 0x171   : > { %1964 = vrcp.f32 %v1550_v20 }
 0x173   : > { %v1959_v50 = vpop.eup %1958 }
 0x174   : > { %v1591_v8 = vmul.f32 %v1959_v50, %v1429_v21 }
 0x175   : > { %v1961_v37 = vpop.eup %1960 }
 0x176   : > { %1608 = vst.msk [vmem:[%s3149_s10 + $0x18] sm:$0xff] %vm1604_vm4, %v1591_v8  ;;  %v1590_v29 = vmul.f32 %v1961_v37, %v1424_v18 }
 0x178   : > { %1607 = vst.msk [vmem:[%s3149_s10 + $0x10] sm:$0xff] %vm1604_vm4, %v1590_v29 }
 0x17c   : > { %v1963_v51 = vpop.eup %1962  ;;  %v1810_v56 = vpop.f32.mrf.mxu0 }
 0x17d   : > { %v1599_v34 = vmul.f32 %v1963_v51, %v1469_v7  ;;  %v1439_v46 = vadd.f32 %v1810_v56, %v3138_v62 }
 0x17e   : > { %v1965_v6 = vpop.eup %1964  ;;  %v1433_v52 = vpop.f32.mrf.mxu0 }
 0x17f   : > { %1616 = vst.msk [vmem:[%s3149_s10 + $0x58] sm:$0xff] %vm1604_vm4, %v1599_v34  ;;  %v1598_v39 = vmul.f32 %v1965_v6, %v1464_v47  ;;  %v1770_v40 = vmul.f32 -1.442695, %v1439_v46  ;;  %v1434_v61 = vadd.f32 %v3138_v62, %v1433_v52 }
 0x181   : > { %1615 = vst.msk [vmem:[%s3149_s10 + $0x50] sm:$0xff] %vm1604_vm4, %v1598_v39  ;;  %1966 = vpow2.f32 %v1770_v40  ;;  %v1769_v54 = vmul.f32 -1.442695, %v1434_v61 }
 0x183   : > { %1968 = vpow2.f32 %v1769_v54 }
 0x185   : > { %v1822_v60 = vpop.f32.mrf.mxu1 }
 0x186   : > { %v1479_v28 = vadd.f32 %v1822_v60, %v3138_v62 }
 0x187   : > { %v1473_v63 = vpop.f32.mrf.mxu1 }
 0x188   : > { %v1778_v23 = vmul.f32 -1.442695, %v1479_v28  ;;  %v1474_v25 = vadd.f32 %v3138_v62, %v1473_v63 }
 0x18a   : > { %1970 = vpow2.f32 %v1778_v23  ;;  %v1777_v10 = vmul.f32 -1.442695, %v1474_v25 }
 0x18c   : > { %1972 = vpow2.f32 %v1777_v10 }
 0x18e   : > { %v1967_v11 = vpop.eup %1966 }
 0x18f   : > { %v1545_v55 = vadd.f32 1.0, %v1967_v11 }
 0x190   : > { %v1969_v1 = vpop.eup %1968 }
 0x191   : > { %1974 = vrcp.f32 %v1545_v55  ;;  %v1544_v3 = vadd.f32 1.0, %v1969_v1 }
 0x193   : > { %1976 = vrcp.f32 %v1544_v3 }
 0x197   : > { %v1971_v58 = vpop.eup %1970 }
 0x198   : > { %v1553_v26 = vadd.f32 1.0, %v1971_v58 }
 0x199   : > { %v1973_v9 = vpop.eup %1972 }
 0x19a   : > { %1978 = vrcp.f32 %v1553_v26  ;;  %v1552_v13 = vadd.f32 1.0, %v1973_v9 }
 0x19c   : > { %1980 = vrcp.f32 %v1552_v13 }
 0x19e   : > { %v1975_v5 = vpop.eup %1974 }
 0x19f   : > { %v1593_v32 = vmul.f32 %v1975_v5, %v1439_v46 }
 0x1a0   : > { %v1977_v43 = vpop.eup %1976 }
 0x1a1   : > { %1610 = vst.msk [vmem:[%s3149_s10 + $0x28] sm:$0xff] %vm1604_vm4, %v1593_v32  ;;  %v1592_v14 = vmul.f32 %v1977_v43, %v1434_v61 }
 0x1a3   : > { %1609 = vst.msk [vmem:[%s3149_s10 + $0x20] sm:$0xff] %vm1604_vm4, %v1592_v14 }
 0x1a4   : > { %v1813_v44 = vpop.f32.mrf.mxu0 }
 0x1a5   : > { %v1449_v42 = vadd.f32 %v1813_v44, %v3138_v62 }
 0x1a6   : > { %v1443_v49 = vpop.f32.mrf.mxu0 }
 0x1a7   : > { %v1979_v53 = vpop.eup %1978  ;;  %v1772_v2 = vmul.f32 -1.442695, %v1449_v42  ;;  %v1444_v38 = vadd.f32 %v3138_v62, %v1443_v49 }
 0x1a8   : > { %v1601_v27 = vmul.f32 %v1979_v53, %v1479_v28 }
 0x1a9   : > { %v1981_v16 = vpop.eup %1980  ;;  %1982 = vpow2.f32 %v1772_v2  ;;  %v1771_v21 = vmul.f32 -1.442695, %v1444_v38 }
 0x1aa   : > { %1618 = vst.msk [vmem:[%s3149_s10 + $0x68] sm:$0xff] %vm1604_vm4, %v1601_v27  ;;  %v1600_v30 = vmul.f32 %v1981_v16, %v1474_v25 }
 0x1ab   : > { %1984 = vpow2.f32 %v1771_v21  ;;  %v1825_v12 = vpop.f32.mrf.mxu1 }
 0x1ac   : > { %1617 = vst.msk [vmem:[%s3149_s10 + $0x60] sm:$0xff] %vm1604_vm4, %v1600_v30  ;;  %v1489_v35 = vadd.f32 %v1825_v12, %v3138_v62 }
 0x1ad   : > { %v1483_v33 = vpop.f32.mrf.mxu1 }
 0x1ae   : > { %v1780_v45 = vmul.f32 -1.442695, %v1489_v35  ;;  %v1484_v18 = vadd.f32 %v3138_v62, %v1483_v33 }
 0x1b0   : > { %1986 = vpow2.f32 %v1780_v45  ;;  %v1779_v41 = vmul.f32 -1.442695, %v1484_v18 }
 0x1b2   : > { %1988 = vpow2.f32 %v1779_v41 }
 0x1b6   : > { %v1983_v24 = vpop.eup %1982 }
 0x1b7   : > { %v1547_v59 = vadd.f32 1.0, %v1983_v24 }
 0x1b8   : > { %v1985_v7 = vpop.eup %1984 }
 0x1b9   : > { %1990 = vrcp.f32 %v1547_v59  ;;  %v1546_v31 = vadd.f32 1.0, %v1985_v7 }
 0x1bb   : > { %1992 = vrcp.f32 %v1546_v31 }
 0x1bd   : > { %v1987_v0 = vpop.eup %1986 }
 0x1be   : > { %v1555_v47 = vadd.f32 1.0, %v1987_v0 }
 0x1bf   : > { %v1989_v15 = vpop.eup %1988 }
 0x1c0   : > { %1994 = vrcp.f32 %v1555_v47  ;;  %v1554_v19 = vadd.f32 1.0, %v1989_v15 }
 0x1c2   : > { %1996 = vrcp.f32 %v1554_v19 }
 0x1c6   : > { %v1991_v62 = vpop.eup %1990 }
 0x1c7   : > { %v1595_v48 = vmul.f32 %v1991_v62, %v1449_v42 }
 0x1c8   : > { %v1993_v4 = vpop.eup %1992 }
 0x1c9   : > { %1612 = vst.msk [vmem:[%s3149_s10 + $0x38] sm:$0xff] %vm1604_vm4, %v1595_v48  ;;  %v1594_v57 = vmul.f32 %v1993_v4, %v1444_v38 }
 0x1cb   : > { %1611 = vst.msk [vmem:[%s3149_s10 + $0x30] sm:$0xff] %vm1604_vm4, %v1594_v57 }
 0x1cd   : > { %v1995_v36 = vpop.eup %1994 }
 0x1ce   : > { %v1603_v17 = vmul.f32 %v1995_v36, %v1489_v35 }
 0x1cf   : > { %v1997_v22 = vpop.eup %1996 }
 0x1d0   : > { %1620 = vst.msk [vmem:[%s3149_s10 + $0x78] sm:$0xff] %vm1604_vm4, %v1603_v17  ;;  %v1602_v20 = vmul.f32 %v1997_v22, %v1484_v18 }
 0x1d2   : > { %1619 = vst.msk [vmem:[%s3149_s10 + $0x70] sm:$0xff] %vm1604_vm4, %v1602_v20 }
 0x1d3 PF: > { %s15_s22 = sadd.s32 1, %s2043_s22   ;;  %s3289_s18 = smov %s2035_s20 }
 0x1d4   : > { %p12_p8 = scmp.ge.s32.totalorder %s15_s22, 6   ;;  %s3290_s19 = smov %s2039_s21 }
 0x1d5   : > { %s3291_s20 = smov %s3294_s23  ;;  %s3292_s21 = smov %s3298_s24 }
 0x1d6   :  { %14 = sbr.rel (!%p12_p8) target bundleno = 3 (0x3), region = 70 }

</bundles_post_ra>
